<compile_context>
chip_gen: v7x
topology: tpu7x:2x2x1
jax: 0.10.0
libtpu: 0.0.40
codegen_flags: <defaults>
</compile_context>

<pallas_src>
import functools

import numpy as np
import jax
import jax.numpy as jnp
from jax import lax
from jax.experimental import pallas as pl
from jax.experimental.pallas import tpu as pltpu

LANE = 128


def _round_up(n, m):
    return ((n + m - 1) // m) * m


def _pad_to(a, shape):
    return jnp.pad(a, [(0, t - s) for s, t in zip(a.shape, shape)])


# --------------------------------------------------------------------------- #
# Kernel: whole MLP for one batch tile. Hidden/latent dims are 128-padded.    #
# --------------------------------------------------------------------------- #
def _encoder_kernel(*refs, nlayers, exact_f32):
    if nlayers > 0:
        (x_ref, w_in_ref, b_in_ref, w_h_ref, b_h_ref,
         w_out_ref, b_out_ref, y_ref) = refs
    else:
        x_ref, w_in_ref, b_in_ref, w_out_ref, b_out_ref, y_ref = refs
        w_h_ref = b_h_ref = None

    w_dtype = w_in_ref.dtype  # MXU operand dtype (bf16 by default)
    prec = lax.Precision.HIGHEST if exact_f32 else None

    def dense(a, w, b):
        # f32 accumulation on the MXU, f32 bias add on the VPU.
        return jnp.dot(a, w, preferred_element_type=jnp.float32,
                       precision=prec) + b

    # input_fc + relu; cast activation straight to the MXU dtype (halves the
    # live inter-layer bytes; the cast would happen before the next dot anyway).
    x = x_ref[...].astype(w_dtype)          # in-kernel cast (f32 x in HBM)
    h = jnp.maximum(dense(x, w_in_ref[...], b_in_ref[...]), 0.0).astype(w_dtype)

    # hidden layers + relu
    if nlayers > 0:
        if nlayers <= 4:
            # small & static -> unrolled
            for l in range(nlayers):
                h = jnp.maximum(dense(h, w_h_ref[l], b_h_ref[l]),
                                0.0).astype(w_dtype)
        else:
            # deep stacks: fori_loop keeps vreg pressure flat
            def body(l, hc):
                return jnp.maximum(dense(hc, w_h_ref[l], b_h_ref[l]),
                                   0.0).astype(w_dtype)
            h = lax.fori_loop(0, nlayers, body, h)

    # output_fc + tanh; lane-dense (128-padded) store
    y = dense(h, w_out_ref[...], b_out_ref[...])
    y_ref[...] = jnp.tanh(y).astype(y_ref.dtype)


# --------------------------------------------------------------------------- #
# One-time parameter preparation (pad + cast, cached across forward calls).   #
# --------------------------------------------------------------------------- #
def prepare_params(params, *, nlayers, mxu_dtype=jnp.bfloat16):
    """Pad hidden/latent dims to 128 and cast weights to the MXU dtype once."""
    w_in, b_in, w_h, b_h, w_out, b_out = params
    in_ch, nhid = w_in.shape
    latent = w_out.shape[1]
    nh_p = _round_up(nhid, LANE)
    lat_p = _round_up(latent, LANE)

    prepped = dict(
        in_ch=in_ch, nhid=nhid, latent=latent, nh_p=nh_p, lat_p=lat_p,
        nlayers=nlayers, mxu_dtype=mxu_dtype,
        # in_ch is consumed as a full-extent block dim -> no lane padding of x.
        w_in=_pad_to(w_in, (in_ch, nh_p)).astype(mxu_dtype),
        b_in=_pad_to(b_in, (1, nh_p)).astype(jnp.float32),
        w_out=_pad_to(w_out, (nh_p, lat_p)).astype(mxu_dtype),
        b_out=_pad_to(b_out, (1, lat_p)).astype(jnp.float32),
    )
    if nlayers > 0:
        prepped["w_h"] = _pad_to(w_h, (nlayers, nh_p, nh_p)).astype(mxu_dtype)
        prepped["b_h"] = _pad_to(b_h, (nlayers, 1, nh_p)).astype(jnp.float32)
    return prepped


# --------------------------------------------------------------------------- #
# Forward wrapper                                                             #
# --------------------------------------------------------------------------- #
def encoder_forward(x, prepped, *, block_b=None):
    """x: (B, in_ch) float32 -> (B, latent_dim) float32."""
    B, in_ch = x.shape
    assert in_ch == prepped["in_ch"]
    nlayers = prepped["nlayers"]
    nh_p, lat_p = prepped["nh_p"], prepped["lat_p"]
    latent = prepped["latent"]
    mxu_dtype = prepped["mxu_dtype"]
    exact_f32 = np.dtype(mxu_dtype) == np.dtype(np.float32)

    # --- batch tiling: x/y tiles are f32 -> sublane tile is 8 ---------------
    sub = 8
    if block_b is None:
        if B >= 128:
            # >=2 grid steps so v7x megacore has work for both TensorCores;
            # cap at 512 rows/step to bound the pipelined VMEM footprint.
            block_b = min(512, _round_up(pl.cdiv(B, 2), sub))
        else:
            block_b = _round_up(B, sub)
    block_b = _round_up(block_b, sub)
    B_p = _round_up(B, block_b)
    grid = (B_p // block_b,)

    x_p = x if B_p == B else _pad_to(x, (B_p, in_ch))   # batch pad only

    # Constant-index operands: single-buffer (same block every grid step;
    # double-buffering would just duplicate them in VMEM).
    def const_spec(shape):
        return pl.BlockSpec(shape, lambda i: (0,) * len(shape),
                            pipeline_mode=pl.Buffered(1))

    args = [x_p, prepped["w_in"], prepped["b_in"]]
    in_specs = [
        pl.BlockSpec((block_b, in_ch), lambda i: (i, 0)),   # x batch tile
        const_spec((in_ch, nh_p)),                          # w_in
        const_spec((1, nh_p)),                              # b_in
    ]
    if nlayers > 0:
        args += [prepped["w_h"], prepped["b_h"]]
        in_specs += [const_spec((nlayers, nh_p, nh_p)),     # w_h stack
                     const_spec((nlayers, 1, nh_p))]        # b_h stack
    args += [prepped["w_out"], prepped["b_out"]]
    in_specs += [const_spec((nh_p, lat_p)),                 # w_out
                 const_spec((1, lat_p))]                    # b_out

    # --- scoped-VMEM budget from the actual footprint (2x headroom) ---------
    weight_bytes = sum(int(a.size) * a.dtype.itemsize for a in args[1:])
    io_bytes = 2 * block_b * in_ch * 4 + 2 * block_b * lat_p * 4  # dbl-buffered x/y
    act_bytes = 4 * block_b * nh_p * 4                            # live intermediates
    vmem_limit = int(min(64 << 20,                                # safe on v7x too
                         max(32 << 20,
                             2 * (weight_bytes + io_bytes + act_bytes))))

    kernel = functools.partial(_encoder_kernel, nlayers=nlayers,
                               exact_f32=exact_f32)

    y_p = pl.pallas_call(
        kernel,
        out_shape=jax.ShapeDtypeStruct((B_p, lat_p), jnp.float32),
        grid_spec=pltpu.PrefetchScalarGridSpec(
            num_scalar_prefetch=0,
            grid=grid,
            in_specs=in_specs,
            out_specs=pl.BlockSpec((block_b, lat_p), lambda i: (i, 0)),
        ),
        compiler_params=pltpu.CompilerParams(
            dimension_semantics=("parallel",),   # batch axis -> megacore on v7x
            vmem_limit_bytes=vmem_limit),
    )(*args)

    return y_p[:B, :latent]


# --------------------------------------------------------------------------- #
# Parameter init + pure-JAX reference                                         #
# --------------------------------------------------------------------------- #
def init_params(key, in_ch, nhid, nlayers, latent_dim):
    """Deterministic parameter init (weights stored pre-transposed: (in, out))."""
    ks = jax.random.split(key, 6)
    scale_in = 1.0 / jnp.sqrt(in_ch)
    scale_h = 1.0 / jnp.sqrt(nhid)
    w_in = jax.random.uniform(ks[0], (in_ch, nhid), jnp.float32, -scale_in, scale_in)
    b_in = jax.random.uniform(ks[1], (1, nhid), jnp.float32, -scale_in, scale_in)
    w_h = jax.random.uniform(ks[2], (nlayers, nhid, nhid), jnp.float32, -scale_h, scale_h)
    b_h = jax.random.uniform(ks[3], (nlayers, 1, nhid), jnp.float32, -scale_h, scale_h)
    w_out = jax.random.uniform(ks[4], (nhid, latent_dim), jnp.float32, -scale_h, scale_h)
    b_out = jax.random.uniform(ks[5], (1, latent_dim), jnp.float32, -scale_h, scale_h)
    return (w_in, b_in, w_h, b_h, w_out, b_out)


def encoder_ref(x, params, *, nlayers):
    """Pure-JAX f32 reference matching the PyTorch forward."""
    w_in, b_in, w_h, b_h, w_out, b_out = params
    h = jnp.maximum(x @ w_in + b_in, 0.0)
    for l in range(nlayers):
        h = jnp.maximum(h @ w_h[l] + b_h[l], 0.0)
    return jnp.tanh(h @ w_out + b_out)


if __name__ == "__main__":
    # Small shapes consistent with the module:
    #   fft_channels (in_ch) = 32, nhid = 64, nlayers = 2, latent_dim = 16, batch = 8
    B, IN_CH, NHID, NLAYERS, LATENT = 8, 32, 64, 2, 16

    key = jax.random.PRNGKey(0)
    kx, kp = jax.random.split(key)
    x = jax.random.normal(kx, (B, IN_CH), jnp.float32)
    params = init_params(kp, IN_CH, NHID, NLAYERS, LATENT)

    y_ref = encoder_ref(x, params, nlayers=NLAYERS)

    # Exact f32 MXU path (precision=HIGHEST): must match the reference tightly.
    pf32 = prepare_params(params, nlayers=NLAYERS, mxu_dtype=jnp.float32)
    y_f32 = jax.block_until_ready(encoder_forward(x, pf32))
    assert y_f32.shape == (B, LATENT)
    assert jnp.allclose(y_f32, y_ref, atol=1e-5, rtol=1e-5)

    # Fast bf16-operand path (f32 accumulation + f32 epilogue): relaxed tolerance.
    pbf16 = prepare_params(params, nlayers=NLAYERS, mxu_dtype=jnp.bfloat16)
    y_bf16 = jax.block_until_ready(encoder_forward(x, pbf16))
    assert y_bf16.shape == (B, LATENT)
    assert jnp.allclose(y_bf16, y_ref, atol=3e-2, rtol=3e-2)

    print("KERNEL_OK")
</pallas_src>

<mosaic_0001>
module attributes {stable_mosaic.version = 11 : i64} {
  func.func @_encoder_kernel(%arg0: i32, %arg1: memref<8x32xf32, #tpu.memory_space<vmem>>, %arg2: memref<32x128xf32, #tpu.memory_space<vmem>>, %arg3: memref<1x128xf32, #tpu.memory_space<vmem>>, %arg4: memref<2x128x128xf32, #tpu.memory_space<vmem>>, %arg5: memref<2x1x128xf32, #tpu.memory_space<vmem>>, %arg6: memref<128x128xf32, #tpu.memory_space<vmem>>, %arg7: memref<1x128xf32, #tpu.memory_space<vmem>>, %arg8: memref<8x128xf32, #tpu.memory_space<vmem>>) attributes {dimension_semantics = [#tpu.dimension_semantics<parallel>], iteration_bounds = array<i64: 1>, scalar_prefetch = 0 : i64, scratch_operands = 0 : i64, tpu.core_type = #tpu.core_type<tc>, window_params = [{transform_indices = @transform_0, window_bounds = array<i64: 8, 32>}, {pipeline_mode = #tpu.pipeline_mode<synchronous>, transform_indices = @transform_1, window_bounds = array<i64: 32, 128>}, {pipeline_mode = #tpu.pipeline_mode<synchronous>, transform_indices = @transform_2, window_bounds = array<i64: 1, 128>}, {pipeline_mode = #tpu.pipeline_mode<synchronous>, transform_indices = @transform_3, window_bounds = array<i64: 2, 128, 128>}, {pipeline_mode = #tpu.pipeline_mode<synchronous>, transform_indices = @transform_4, window_bounds = array<i64: 2, 1, 128>}, {pipeline_mode = #tpu.pipeline_mode<synchronous>, transform_indices = @transform_5, window_bounds = array<i64: 128, 128>}, {pipeline_mode = #tpu.pipeline_mode<synchronous>, transform_indices = @transform_6, window_bounds = array<i64: 1, 128>}, {transform_indices = @transform_7, window_bounds = array<i64: 8, 128>}]} {
    %c0 = arith.constant 0 : index
    %c0_0 = arith.constant 0 : index
    %0 = vector.load %arg1[%c0, %c0_0] : memref<8x32xf32, #tpu.memory_space<vmem>>, vector<8x32xf32>
    %c0_1 = arith.constant 0 : index
    %c0_2 = arith.constant 0 : index
    %1 = vector.load %arg2[%c0_1, %c0_2] : memref<32x128xf32, #tpu.memory_space<vmem>>, vector<32x128xf32>
    %c0_3 = arith.constant 0 : index
    %c0_4 = arith.constant 0 : index
    %2 = vector.load %arg3[%c0_3, %c0_4] : memref<1x128xf32, #tpu.memory_space<vmem>>, vector<1x128xf32>
    %cst = arith.constant dense<0.000000e+00> : vector<8x128xf32>
    %3 = tpu.matmul %0, %1, %cst {dimension_numbers = #tpu.dot_dimension_numbers<[1], [0], [0], [1], [0, 0, 1, 1], [], []>, precision = #tpu.contract_precision<fp32>} : vector<8x32xf32>, vector<32x128xf32>, vector<8x128xf32> -> vector<8x128xf32>
    %4 = vector.broadcast %2 : vector<1x128xf32> to vector<8x128xf32>
    %5 = arith.addf %3, %4 : vector<8x128xf32>
    %cst_5 = arith.constant 0.000000e+00 : f32
    %6 = vector.broadcast %cst_5 : f32 to vector<8x128xf32>
    %7 = arith.maximumf %5, %6 : vector<8x128xf32>
    %c0_6 = arith.constant 0 : index
    %c0_7 = arith.constant 0 : index
    %c0_8 = arith.constant 0 : index
    %8 = vector.load %arg4[%c0_6, %c0_7, %c0_8] : memref<2x128x128xf32, #tpu.memory_space<vmem>>, vector<1x128x128xf32>
    %9 = vector.shape_cast %8 : vector<1x128x128xf32> to vector<128x128xf32>
    %c0_9 = arith.constant 0 : index
    %c0_10 = arith.constant 0 : index
    %c0_11 = arith.constant 0 : index
    %10 = vector.load %arg5[%c0_9, %c0_10, %c0_11] : memref<2x1x128xf32, #tpu.memory_space<vmem>>, vector<1x1x128xf32>
    %11 = vector.shape_cast %10 : vector<1x1x128xf32> to vector<1x128xf32>
    %cst_12 = arith.constant dense<0.000000e+00> : vector<8x128xf32>
    %12 = tpu.matmul %7, %9, %cst_12 {dimension_numbers = #tpu.dot_dimension_numbers<[1], [0], [0], [1], [0, 0, 1, 1], [], []>, precision = #tpu.contract_precision<fp32>} : vector<8x128xf32>, vector<128x128xf32>, vector<8x128xf32> -> vector<8x128xf32>
    %13 = vector.broadcast %11 : vector<1x128xf32> to vector<8x128xf32>
    %14 = arith.addf %12, %13 : vector<8x128xf32>
    %cst_13 = arith.constant 0.000000e+00 : f32
    %15 = vector.broadcast %cst_13 : f32 to vector<8x128xf32>
    %16 = arith.maximumf %14, %15 : vector<8x128xf32>
    %c1 = arith.constant 1 : index
    %c0_14 = arith.constant 0 : index
    %c0_15 = arith.constant 0 : index
    %17 = vector.load %arg4[%c1, %c0_14, %c0_15] : memref<2x128x128xf32, #tpu.memory_space<vmem>>, vector<1x128x128xf32>
    %18 = vector.shape_cast %17 : vector<1x128x128xf32> to vector<128x128xf32>
    %c1_16 = arith.constant 1 : index
    %c0_17 = arith.constant 0 : index
    %c0_18 = arith.constant 0 : index
    %19 = vector.load %arg5[%c1_16, %c0_17, %c0_18] : memref<2x1x128xf32, #tpu.memory_space<vmem>>, vector<1x1x128xf32>
    %20 = vector.shape_cast %19 : vector<1x1x128xf32> to vector<1x128xf32>
    %cst_19 = arith.constant dense<0.000000e+00> : vector<8x128xf32>
    %21 = tpu.matmul %16, %18, %cst_19 {dimension_numbers = #tpu.dot_dimension_numbers<[1], [0], [0], [1], [0, 0, 1, 1], [], []>, precision = #tpu.contract_precision<fp32>} : vector<8x128xf32>, vector<128x128xf32>, vector<8x128xf32> -> vector<8x128xf32>
    %22 = vector.broadcast %20 : vector<1x128xf32> to vector<8x128xf32>
    %23 = arith.addf %21, %22 : vector<8x128xf32>
    %cst_20 = arith.constant 0.000000e+00 : f32
    %24 = vector.broadcast %cst_20 : f32 to vector<8x128xf32>
    %25 = arith.maximumf %23, %24 : vector<8x128xf32>
    %c0_21 = arith.constant 0 : index
    %c0_22 = arith.constant 0 : index
    %26 = vector.load %arg6[%c0_21, %c0_22] : memref<128x128xf32, #tpu.memory_space<vmem>>, vector<128x128xf32>
    %c0_23 = arith.constant 0 : index
    %c0_24 = arith.constant 0 : index
    %27 = vector.load %arg7[%c0_23, %c0_24] : memref<1x128xf32, #tpu.memory_space<vmem>>, vector<1x128xf32>
    %cst_25 = arith.constant dense<0.000000e+00> : vector<8x128xf32>
    %28 = tpu.matmul %25, %26, %cst_25 {dimension_numbers = #tpu.dot_dimension_numbers<[1], [0], [0], [1], [0, 0, 1, 1], [], []>, precision = #tpu.contract_precision<fp32>} : vector<8x128xf32>, vector<128x128xf32>, vector<8x128xf32> -> vector<8x128xf32>
    %29 = vector.broadcast %27 : vector<1x128xf32> to vector<8x128xf32>
    %30 = arith.addf %28, %29 : vector<8x128xf32>
    %31 = math.tanh %30 : vector<8x128xf32>
    %c0_26 = arith.constant 0 : index
    %c0_27 = arith.constant 0 : index
    %32 = vector.load %arg8[%c0_26, %c0_27] : memref<8x128xf32, #tpu.memory_space<vmem>>, vector<8x128xf32>
    tpu.vector_store %arg8[%c0_26, %c0_27], %31 {strides = array<i32>} : memref<8x128xf32, #tpu.memory_space<vmem>>, vector<8x128xf32>,
    return
  }
  func.func @transform_0(%arg0: i32) -> (i32, i32) {
    %c0_i32 = arith.constant 0 : i32
    %c0_i32_0 = arith.constant 0 : i32
    return %arg0, %c0_i32 : i32, i32
  }
  func.func @transform_1(%arg0: i32) -> (i32, i32) {
    %c0_i32 = arith.constant 0 : i32
    %c0_i32_0 = arith.constant 0 : i32
    %c0_i32_1 = arith.constant 0 : i32
    return %c0_i32, %c0_i32_0 : i32, i32
  }
  func.func @transform_2(%arg0: i32) -> (i32, i32) {
    %c0_i32 = arith.constant 0 : i32
    %c0_i32_0 = arith.constant 0 : i32
    %c0_i32_1 = arith.constant 0 : i32
    return %c0_i32, %c0_i32_0 : i32, i32
  }
  func.func @transform_3(%arg0: i32) -> (i32, i32, i32) {
    %c0_i32 = arith.constant 0 : i32
    %c0_i32_0 = arith.constant 0 : i32
    %c0_i32_1 = arith.constant 0 : i32
    %c0_i32_2 = arith.constant 0 : i32
    return %c0_i32, %c0_i32_0, %c0_i32_1 : i32, i32, i32
  }
  func.func @transform_4(%arg0: i32) -> (i32, i32, i32) {
    %c0_i32 = arith.constant 0 : i32
    %c0_i32_0 = arith.constant 0 : i32
    %c0_i32_1 = arith.constant 0 : i32
    %c0_i32_2 = arith.constant 0 : i32
    return %c0_i32, %c0_i32_0, %c0_i32_1 : i32, i32, i32
  }
  func.func @transform_5(%arg0: i32) -> (i32, i32) {
    %c0_i32 = arith.constant 0 : i32
    %c0_i32_0 = arith.constant 0 : i32
    %c0_i32_1 = arith.constant 0 : i32
    return %c0_i32, %c0_i32_0 : i32, i32
  }
  func.func @transform_6(%arg0: i32) -> (i32, i32) {
    %c0_i32 = arith.constant 0 : i32
    %c0_i32_0 = arith.constant 0 : i32
    %c0_i32_1 = arith.constant 0 : i32
    return %c0_i32, %c0_i32_0 : i32, i32
  }
  func.func @transform_7(%arg0: i32) -> (i32, i32) {
    %c0_i32 = arith.constant 0 : i32
    %c0_i32_0 = arith.constant 0 : i32
    return %arg0, %c0_i32 : i32, i32
  }
}

</mosaic_0001>

<bundles_post_ra>
// kernel: tpu_custom_call.1
= control target key start
LH: loop header
LB: loop body
LE: loop exit
PB: predicated region body
PF: predicated region fallthrough
CT: control target
= control target key end

     0   :  { %12 = vsyncpa [#allocation3], 0  ;;  %s5345_s0 = inlined_call_operand.hbm [shape: f32[8,32], index: 0, kind: input, shape index: {}]   ;;  %s5346_s1 = inlined_call_operand.hbm [shape: f32[32,128], index: 1, kind: input, shape index: {}]   ;;  %s5347_s2 = inlined_call_operand.vmem [shape: f32[1,128], index: 2, kind: input, shape index: {}]   ;;  %s5348_s3 = inlined_call_operand.hbm [shape: f32[2,128,128], index: 3, kind: input, shape index: {}]   ;;  %s5349_s4 = inlined_call_operand.vmem [shape: f32[2,1,128], index: 4, kind: input, shape index: {}]   ;;  %s5350_s5 = inlined_call_operand.hbm [shape: f32[128,128], index: 5, kind: input, shape index: {}]   ;;  %s5351_s6 = inlined_call_operand.vmem [shape: f32[1,128], index: 6, kind: input, shape index: {}]   ;;  %s5352_s7 = inlined_call_operand.hbm [shape: f32[8,128], index: 7, kind: output, shape index: {}]  }
   0x1   :  { %13 = vsyncpa [#allocation6], 0 }
   0x2   :  { %14 = vsyncpa [#allocation9], 0 }
   0x3   :  { %15 = vsyncpa [#allocation4], 0  ;;  %s4275_s24 = smov [#allocation5]   ;;  %s4157_s28 = scalar_lea.hbm %s5346_s1, 512 }
   0x4   :  { %s31_s25 = sshll.u32 %s4275_s24, 4  ;;  %p4158_p0 = scmp.ne.s32.totalorder %s5346_s1, %s4157_s28  ;;  %s32_s25 = int_to_ptr.vmem [resolvable:$true] %s31_s25 }
   0x5   :  { %p4161_p1 = scmp.lt.u32.totalorder %s4157_s28, %s5346_s1 }
   0x7   :  { %p4163_p2 = pnand %p4161_p1, %p4158_p0 }
   0x9   :  { %4166 = shalt.err (!%p4163_p2)
}
   0xa   :  { %s4167_s10 = scalar_lea.vmem %s32_s25, 512  ;;  %p4172_p4 = scmp.lt.s32.totalorder %s32_s25, %s32_s25 }
   0xb   :  { %p4168_p3 = scmp.ne.s32.totalorder %s32_s25, %s4167_s10  ;;  %p4173_p5 = scmp.lt.s32.totalorder %s4167_s10, %s4167_s10 }
   0xd   :  { %p4174_p6 = por %p4173_p5, %p4172_p4 }
   0xf   :  { %p4175_p7 = pnand %p4174_p6, %p4168_p3 }
  0x11   :  { %4178 = shalt.err (!%p4175_p7)
}
  0x12   :  { %s4276_s11 = smov 128   ;;  %s4277_s12 = smov 8  }
  0x13   :  { %37 = dma.hbm_to_vmem [thread:$0]  %s5346_s1, 512, %s32_s25, [#allocation6], %s4276_s11, %s4276_s11, %s4277_s12  }
  0x14   :  { %s4278_s15 = smov [#allocation2]   ;;  %s4279_s17 = smov [#allocation7]  }
  0x15   :  { %s22_s16 = sshll.u32 %s4278_s15, 4  ;;  %s45_s18 = sshll.u32 %s4279_s17, 4  ;;  %s23_s16 = int_to_ptr.vmem [resolvable:$true] %s22_s16  ;;  %s46_s18 = int_to_ptr.vmem [resolvable:$true] %s45_s18 }
  0x16   :  { %s4179_s21 = scalar_lea.hbm %s5345_s0, 128 }
  0x17   :  { %p4180_p8 = scmp.ne.s32.totalorder %s5345_s0, %s4179_s21  ;;  %p4183_p9 = scmp.lt.u32.totalorder %s4179_s21, %s5345_s0 }
  0x19   :  { %p4185_p10 = pnand %p4183_p9, %p4180_p8 }
  0x1b   :  { %4188 = shalt.err (!%p4185_p10)
}
  0x1c   :  { %s4189_s1 = scalar_lea.vmem %s23_s16, 128  ;;  %p4194_p12 = scmp.lt.s32.totalorder %s23_s16, %s23_s16 }
  0x1d   :  { %p4190_p11 = scmp.ne.s32.totalorder %s23_s16, %s4189_s1  ;;  %p4195_p13 = scmp.lt.s32.totalorder %s4189_s1, %s4189_s1 }
  0x1f   :  { %p4196_p0 = por %p4195_p13, %p4194_p12 }
  0x21   :  { %p4197_p1 = pnand %p4196_p0, %p4190_p11 }
  0x23   :  { %4200 = shalt.err (!%p4197_p1)
}
  0x24   :  { %25 = dma.hbm_to_vmem [thread:$0]  %s5345_s0, 128, %s23_s16, [#allocation3]  }
  0x25   :  { %s4201_s30 = scalar_lea.hbm %s5348_s3, 4096 }
  0x26   :  { %p4202_p2 = scmp.ne.s32.totalorder %s5348_s3, %s4201_s30  ;;  %p4205_p3 = scmp.lt.u32.totalorder %s4201_s30, %s5348_s3 }
  0x28   :  { %p4207_p4 = pnand %p4205_p3, %p4202_p2 }
  0x2a   :  { %4210 = shalt.err (!%p4207_p4)
}
  0x2b   :  { %s4211_s14 = scalar_lea.vmem %s46_s18, 4096  ;;  %p4216_p6 = scmp.lt.s32.totalorder %s46_s18, %s46_s18 }
  0x2c   :  { %p4212_p5 = scmp.ne.s32.totalorder %s46_s18, %s4211_s14  ;;  %p4217_p7 = scmp.lt.s32.totalorder %s4211_s14, %s4211_s14 }
  0x2e   :  { %p4218_p8 = por %p4217_p7, %p4216_p6 }
  0x30   :  { %p4219_p9 = pnand %p4218_p8, %p4212_p5 }
  0x32   :  { %4222 = shalt.err (!%p4219_p9)
}
  0x33   :  { %51 = dma.hbm_to_vmem [thread:$0]  %s5348_s3, 4096, %s46_s18, [#allocation6], %s4276_s11, %s4276_s11, %s4277_s12  }
  0x34   :  { %s4280_s16 = smov [#allocation8]   ;;  %s4223_s21 = scalar_lea.hbm %s5350_s5, 2048 }
  0x35   :  { %s59_s17 = sshll.u32 %s4280_s16, 4  ;;  %p4224_p10 = scmp.ne.s32.totalorder %s5350_s5, %s4223_s21  ;;  %s60_s17 = int_to_ptr.vmem [resolvable:$true] %s59_s17 }
  0x36   :  { %p4227_p11 = scmp.lt.u32.totalorder %s4223_s21, %s5350_s5 }
  0x38   :  { %p4229_p12 = pnand %p4227_p11, %p4224_p10 }
  0x3a   :  { %4232 = shalt.err (!%p4229_p12)
}
  0x3b   :  { %s4233_s1 = scalar_lea.vmem %s60_s17, 2048  ;;  %p4238_p0 = scmp.lt.s32.totalorder %s60_s17, %s60_s17 }
  0x3c   :  { %p4234_p13 = scmp.ne.s32.totalorder %s60_s17, %s4233_s1  ;;  %p4239_p1 = scmp.lt.s32.totalorder %s4233_s1, %s4233_s1 }
  0x3e   :  { %p4240_p2 = por %p4239_p1, %p4238_p0 }
  0x40   :  { %p4241_p3 = pnand %p4240_p2, %p4234_p13 }
  0x42   :  { %4244 = shalt.err (!%p4241_p3)
}
  0x43   :  { %65 = dma.hbm_to_vmem [thread:$0]  %s5350_s5, 2048, %s60_s17, [#allocation9], %s4276_s11, %s4276_s11, %s4277_s12  }
  0x44   :  { %4267 = dma.done.wait [#allocation3], 128  }
  0x45   :  { %4268 = vsyncadd [#allocation3], 4294967168 }
  0x46   :  { %4269 = dma.done.wait [#allocation6], 4608  }
  0x47   :  { %4270 = vsyncadd [#allocation6], 4294962688 }
  0x48   :  { %4271 = dma.done.wait [#allocation9], 2048  }
  0x49   :  { %4272 = vsyncadd [#allocation9], 4294965248  ;;  %v4281_v0 = vmov 0.0|0.0   ;;  %vm4282_vm0 = vmmov 0   ;;  %v4283_v1 = vmov 0.0   ;;  %vm92_vm1 = vcmask 261120  }
  0x4a   :  { %3634 = vmatprep.subr.bf16.mxu0 %v4281_v0  ;;  %2946 = vmatprep.mubr.msk.f32.mxu0 %vm4282_vm0, %v4283_v1  ;;  %v81_v2 = vld [vmem:[#allocation5] sm:$0xff]  ;;  %v82_v3 = vld [vmem:[#allocation5 + $0x8] sm:$0xff]  ;;  %v83_v4 = vld [vmem:[#allocation5 + $0x10] sm:$0xff]  ;;  %s4284_s29 = smov [#allocation10]  }
  0x4b   :  { %3718 = vmatprep.subr.bf16.mxu1 %v4281_v0  ;;  %3106 = vmatprep.mubr.msk.f32.mxu1 %vm4282_vm0, %v4283_v1  ;;  %v97_v5 = vand.u32 4294901760, %v81_v2  ;;  %v100_v6 = vand.u32 4294901760, %v82_v3  ;;  %v84_v7 = vld [vmem:[#allocation5 + $0x18] sm:$0xff]  ;;  %v103_v8 = vand.u32 4294901760, %v83_v4  ;;  %v4388_v10 = vld [vmem:[#allocation7] sm:$0xff]  ;;  %v4390_v13 = vld [vmem:[#allocation7 + $0x8] sm:$0xff] }
  0x4c   :  { %v80_v9 = vld [vmem:[#allocation2] sm:$0xff]  ;;  %v106_v11 = vand.u32 4294901760, %v84_v7  ;;  %v606_v14 = vand.u32 4294901760, %v4388_v10  ;;  %v609_v25 = vand.u32 4294901760, %v4390_v13  ;;  %v4431_v32 = vld [vmem:[#allocation7 + $0x10] sm:$0xff]  ;;  %v4451_v42 = vld [vmem:[#allocation7 + $0x20] sm:$0xff] }
  0x4d   :  { %v94_v12 = vsel %vm92_vm1, %v80_v9, 0  ;;  %v4393_v15 = vpack.c.bf16 %v100_v6, %v97_v5  ;;  %v4395_v16 = vsub.f32 %v81_v2, %v97_v5  ;;  %v4397_v17 = vsub.f32 %v82_v3, %v100_v6  ;;  %v4433_v33 = vld [vmem:[#allocation7 + $0x18] sm:$0xff]  ;;  %v4453_v43 = vld [vmem:[#allocation7 + $0x28] sm:$0xff]  ;;  %v4455_v44 = vld [vmem:[#allocation7 + $0x30] sm:$0xff]  ;;  %s2586_s30 = sshll.u32 %s4284_s29, 4  ;;  %s2587_s30 = int_to_ptr.vmem [resolvable:$true] %s2586_s30 }
  0x4e   :  { %v4399_v18 = vsub.f32 %v83_v4, %v103_v8  ;;  %v4401_v19 = vpack.c.bf16 %v106_v11, %v103_v8  ;;  %v4403_v20 = vsub.f32 %v84_v7, %v106_v11  ;;  %v4405_v21 = vand.u32 4294901760, %v94_v12  ;;  %v4459_v49 = vld [vmem:[#allocation7 + $0x38] sm:$0xff]  ;;  %v4474_v56 = vld [vmem:[#allocation7 + $0x40] sm:$0xff]  ;;  %v4480_v59 = vld [vmem:[#allocation7 + $0x48] sm:$0xff]  ;;  %s4245_s8 = scalar_lea.vmem %s2587_s30, 128  ;;  %p4250_p5 = scmp.lt.s32.totalorder %s2587_s30, %s2587_s30 }
  0x4f   :  { %3636 = vmatpush3.bf16.msra.mxu0 %v4393_v15  ;;  %v178_v22 = vand.u32 4294901760, %v4395_v16  ;;  %v185_v23 = vand.u32 4294901760, %v4397_v17  ;;  %v4429_v31 = vsub.f32 %v4388_v10, %v606_v14  ;;  %v4443_v38 = vsub.f32 %v4390_v13, %v609_v25  ;;  %v4509_v6 = vld [vmem:[#allocation7 + $0x50] sm:$0xff]  ;;  %v4512_v7 = vld [vmem:[#allocation7 + $0x58] sm:$0xff]  ;;  %p4246_p4 = scmp.ne.s32.totalorder %s2587_s30, %s4245_s8  ;;  %p4251_p6 = scmp.lt.s32.totalorder %s4245_s8, %s4245_s8 }
  0x50   :  { %v192_v24 = vand.u32 4294901760, %v4399_v18  ;;  %3637 = vmatprep.subr.bf16.mxu0 %v4281_v0  ;;  %v4414_v26 = vsub.f32 %v94_v12, %v4405_v21  ;;  %v199_v27 = vand.u32 4294901760, %v4403_v20  ;;  %v612_v40 = vand.u32 4294901760, %v4431_v32 }
  0x51   :  { %v179_v28 = vsub.f32 %v4395_v16, %v178_v22  ;;  %v186_v29 = vsub.f32 %v4397_v17, %v185_v23  ;;  %v615_v41 = vand.u32 4294901760, %v4433_v33  ;;  %v3719_v48 = vpack.c.bf16 %v4443_v38, %v4429_v31  ;;  %p4252_p7 = por %p4251_p6, %p4250_p5 }
  0x52   :  { %v193_v30 = vsub.f32 %v4399_v18, %v192_v24  ;;  %v167_v34 = vand.u32 4294901760, %v4414_v26  ;;  %v200_v35 = vsub.f32 %v4403_v20, %v199_v27  ;;  %v4464_v51 = vsub.f32 %v4431_v32, %v612_v40 }
  0x53   :  { %3639 = vmatpush3.bf16.msra.mxu0 %v4401_v19  ;;  %v180_v36 = vand.u32 4294901760, %v179_v28  ;;  %v187_v37 = vand.u32 4294901760, %v186_v29  ;;  %v4469_v52 = vsub.f32 %v4433_v33, %v615_v41  ;;  %3720 = vmatpush3.bf16.msra.mxu1 %v3719_v48  ;;  %v618_v53 = vand.u32 4294901760, %v4451_v42  ;;  %p4253_p8 = pnand %p4252_p7, %p4246_p4 }
  0x54   :  { %v168_v39 = vsub.f32 %v4414_v26, %v167_v34  ;;  %3640 = vmatprep.subr.bf16.mxu0 %v4281_v0  ;;  %v194_v46 = vand.u32 4294901760, %v193_v30  ;;  %v201_v47 = vand.u32 4294901760, %v200_v35  ;;  %v621_v54 = vand.u32 4294901760, %v4453_v43  ;;  %3721 = vmatprep.subr.bf16.mxu1 %v4281_v0 }
  0x55   :  { %v3641_v45 = vpack.c.bf16 %v187_v37, %v180_v36  ;;  %v624_v55 = vand.u32 4294901760, %v4455_v44  ;;  %v3722_v57 = vpack.c.bf16 %v4469_v52, %v4464_v51  ;;  %v627_v58 = vand.u32 4294901760, %v4459_v49 }
  0x56   :  { %v169_v50 = vand.u32 4294901760, %v168_v39  ;;  %v3644_v60 = vpack.c.bf16 %v201_v47, %v194_v46  ;;  %v4487_v61 = vsub.f32 %v4451_v42, %v618_v53  ;;  %v4492_v62 = vsub.f32 %v4453_v43, %v621_v54 }
  0x57   :  { %v630_v63 = vand.u32 4294901760, %v4474_v56  ;;  %3723 = vmatpush3.bf16.msra.mxu1 %v3722_v57  ;;  %v4501_v3 = vsub.f32 %v4455_v44, %v624_v55  ;;  %v4506_v4 = vsub.f32 %v4459_v49, %v627_v58  ;;  %v633_v5 = vand.u32 4294901760, %v4480_v59 }
  0x58   :  { %2947 = vmatmul.mubr.f32.vlgmr.msra.gmra.mrb[0].mxu0 %v169_v50  ;;  %v3725_v2 = vpack.c.bf16 %v4492_v62, %v4487_v61  ;;  %3724 = vmatprep.subr.bf16.mxu1 %v4281_v0  ;;  %v3647_v8 = vpack.c.bf16 %v4397_v17, %v4395_v16  ;;  %v636_v9 = vand.u32 4294901760, %v4509_v6  ;;  %v639_v29 = vand.u32 4294901760, %v4512_v7  ;;  %v594_v17 = vld [vmem:[#allocation7 + $0x60] sm:$0xff] }
  0x59   :  { %3642 = vmatpush3.bf16.msra.mxu0 %v3641_v45  ;;  %2957 = vmatprep.mubr.msk.f32.mxu0 %vm4282_vm0, %v4283_v1  ;;  %v3728_v11 = vpack.c.bf16 %v4506_v4, %v4501_v3  ;;  %v4523_v12 = vsub.f32 %v4474_v56, %v630_v63  ;;  %v4528_v28 = vsub.f32 %v4480_v59, %v633_v5 }
  0x5a   :  { %3643 = vmatprep.subr.bf16.mxu0 %v4281_v0  ;;  %v3650_v30 = vpack.c.bf16 %v4403_v20, %v4399_v18  ;;  %v4543_v36 = vsub.f32 %v4509_v6, %v636_v9  ;;  %v4548_v37 = vsub.f32 %v4512_v7, %v639_v29  ;;  %v3659_v45 = vpack.c.bf16 %v185_v23, %v178_v22  ;;  %v595_v18 = vld [vmem:[#allocation7 + $0x68] sm:$0xff]  ;;  %v596_v23 = vld [vmem:[#allocation7 + $0x70] sm:$0xff] }
  0x5b   :  { %3726 = vmatpush3.bf16.msra.mxu1 %v3725_v2  ;;  %v3731_v35 = vpack.c.bf16 %v4528_v28, %v4523_v12  ;;  %v3662_v46 = vpack.c.bf16 %v199_v27, %v192_v24  ;;  %v4587_v16 = vpack.c.bf16 %v609_v25, %v606_v14  ;;  %v4606_v10 = vpack.c.bf16 %v621_v54, %v618_v53  ;;  %v597_v24 = vld [vmem:[#allocation7 + $0x78] sm:$0xff] }
  0x5c   :  { %3727 = vmatprep.subr.bf16.mxu1 %v4281_v0  ;;  %v3734_v39 = vpack.c.bf16 %v4548_v37, %v4543_v36  ;;  %v4614_v13 = vpack.c.bf16 %v627_v58, %v624_v55  ;;  %v4622_v14 = vpack.c.bf16 %v633_v5, %v630_v63  ;;  %v645_v20 = vand.u32 4294901760, %v595_v18  ;;  %v2597_v5 = vld [vmem:[%s5347_s2] ss:$0 sm:$0xff] }
  0x5d   :  { %3645 = vmatpush3.bf16.msra.mxu0 %v3644_v60  ;;  %v651_v27 = vand.u32 4294901760, %v597_v24  ;;  %v4631_v32 = vpack.c.bf16 %v639_v29, %v636_v9  ;;  %v699_v6 = vand.u32 4294901760, %v4429_v31  ;;  %v706_v7 = vand.u32 4294901760, %v4443_v38 }
  0x5e   :  { %3646 = vmatprep.subr.bf16.mxu0 %v4281_v0  ;;  %v789_v22 = vsub.f32 %v595_v18, %v645_v20 }
  0x5f   :  { %3729 = vmatpush3.bf16.msra.mxu1 %v3728_v11 }
  0x60   :  { %2958 = vmatmul.mubr.f32.vlgmr.msra.gmra.mrb[0].mxu0 %v4405_v21  ;;  %3730 = vmatprep.subr.bf16.mxu1 %v4281_v0  ;;  %v790_v44 = vand.u32 4294901760, %v789_v22 }
  0x61   :  { %3648 = vmatpush3.bf16.msra.mxu0 %v3647_v8  ;;  %2968 = vmatprep.mubr.msk.f32.mxu0 %vm4282_vm0, %v4283_v1 }
  0x62   :  { %3649 = vmatprep.subr.bf16.mxu0 %v4281_v0  ;;  %v791_v48 = vsub.f32 %v789_v22, %v790_v44 }
  0x63   :  { %3732 = vmatpush3.bf16.msra.mxu1 %v3731_v35  ;;  %v707_v35 = vsub.f32 %v4443_v38, %v706_v7 }
  0x64   :  { %3733 = vmatprep.subr.bf16.mxu1 %v4281_v0  ;;  %v792_v50 = vand.u32 4294901760, %v791_v48 }
  0x65   :  { %3651 = vmatpush3.bf16.msra.mxu0 %v3650_v30  ;;  %v700_v30 = vsub.f32 %v4429_v31, %v699_v6 }
  0x66   :  { %3652 = vmatprep.subr.bf16.mxu0 %v4281_v0 }
  0x67   :  { %3735 = vmatpush3.bf16.msra.mxu1 %v3734_v39  ;;  %v713_v39 = vand.u32 4294901760, %v4464_v51 }
  0x68   :  { %2969 = vmatmul.mubr.f32.vlgmr.msra.gmra.mrb[0].mxu0 %v4414_v26  ;;  %3736 = vmatprep.subr.bf16.mxu1 %v4281_v0  ;;  %v648_v26 = vand.u32 4294901760, %v596_v23 }
  0x69   :  { %3654 = vmatpush3.bf16.msra.mxu0 %v4393_v15  ;;  %2979 = vmatprep.mubr.msk.f32.mxu0 %vm4282_vm0, %v4283_v1 }
  0x6a   :  { %3655 = vmatprep.subr.bf16.mxu0 %v4281_v0  ;;  %v796_v33 = vsub.f32 %v596_v23, %v648_v26  ;;  %v4641_v42 = vpack.c.bf16 %v651_v27, %v648_v26 }
  0x6c   :  { %v797_v53 = vand.u32 4294901760, %v796_v33 }
  0x6d   :  { %3657 = vmatpush3.bf16.msra.mxu0 %v4401_v19 }
  0x6e   :  { %3658 = vmatprep.subr.bf16.mxu0 %v4281_v0  ;;  %v798_v56 = vsub.f32 %v796_v33, %v797_v53 }
  0x70   :  { %2980 = vmatmul.mubr.f32.vlgmr.msra.gmra.mrb[0].mxu0 %v167_v34  ;;  %v803_v34 = vsub.f32 %v597_v24, %v651_v27  ;;  %v799_v58 = vand.u32 4294901760, %v798_v56  ;;  %v755_v56 = vand.u32 4294901760, %v4523_v12 }
  0x71   :  { %3660 = vmatpush3.bf16.msra.mxu0 %v3659_v45  ;;  %2990 = vmatprep.mubr.msk.f32.mxu0 %vm4282_vm0, %v4283_v1  ;;  %v720_v45 = vand.u32 4294901760, %v4469_v52 }
  0x72   :  { %3661 = vmatprep.subr.bf16.mxu0 %v4281_v0  ;;  %v804_v54 = vand.u32 4294901760, %v803_v34 }
  0x73   :  { %v721_v23 = vsub.f32 %v4469_v52, %v720_v45 }
  0x74   :  { %v805_v57 = vsub.f32 %v803_v34, %v804_v54  ;;  %v4651_v2 = vpack.c.bf16 %v804_v54, %v797_v53 }
  0x75   :  { %3663 = vmatpush3.bf16.msra.mxu0 %v3662_v46 }
  0x76   :  { %3664 = vmatprep.subr.bf16.mxu0 %v4281_v0  ;;  %v806_v59 = vand.u32 4294901760, %v805_v57  ;;  %v762_v57 = vand.u32 4294901760, %v4528_v28 }
  0x78   :  { %2991 = vmatmul.mubr.f32.vlgmr.msra.gmra.mrb[0].mxu0 %v4405_v21  ;;  %v4647_v60 = vpack.c.bf16 %v806_v59, %v799_v58 }
  0x79   :  { %3666 = vmatpush3.bf16.msra.mxu0 %v4393_v15  ;;  %3001 = vmatprep.mubr.msk.f32.mxu0 %vm4282_vm0, %v4283_v1  ;;  %v4596_v15 = vpack.c.bf16 %v615_v41, %v612_v40  ;;  %v3740_v40 = vpack.c.bf16 %v803_v34, %v796_v33  ;;  %v741_v33 = vand.u32 4294901760, %v4501_v3  ;;  %v748_v34 = vand.u32 4294901760, %v4506_v4 }
  0x7a   :  { %3667 = vmatprep.subr.bf16.mxu0 %v4281_v0 }
  0x7b   :  { %v749_v53 = vsub.f32 %v4506_v4, %v748_v34  ;;  %v3776_v38 = vpack.c.bf16 %v748_v34, %v741_v33 }
  0x7d   :  { %3669 = vmatpush3.bf16.msra.mxu0 %v4401_v19  ;;  %v642_v19 = vand.u32 4294901760, %v594_v17 }
  0x7e   :  { %3670 = vmatprep.subr.bf16.mxu0 %v4281_v0 }
  0x7f   :  { %v4636_v41 = vpack.c.bf16 %v645_v20, %v642_v19  ;;  %v701_v20 = vand.u32 4294901760, %v700_v30 }
  0x80   :  { %3002 = vmatmul.mubr.f32.vlgmr.msra.gmra.mrb[0].mxu0 %v4405_v21  ;;  %v782_v21 = vsub.f32 %v594_v17, %v642_v19  ;;  %v727_v17 = vand.u32 4294901760, %v4487_v61  ;;  %v734_v19 = vand.u32 4294901760, %v4492_v62 }
  0x81   :  { %3672 = vmatpush3.bf16.msra.mxu0 %v4587_v16  ;;  %3036 = vmatprep.mubr.msk.f32.mxu0 %vm4282_vm0, %v4283_v1 }
  0x82   :  { %3673 = vmatprep.subr.bf16.mxu0 %v4281_v0  ;;  %v3737_v25 = vpack.c.bf16 %v789_v22, %v782_v21  ;;  %v783_v43 = vand.u32 4294901760, %v782_v21  ;;  %v714_v22 = vsub.f32 %v4464_v51, %v713_v39  ;;  %v735_v27 = vsub.f32 %v4492_v62, %v734_v19  ;;  %v1249_v62 = vld [vmem:[#allocation7 + $0x88] sm:$0xff] }
  0x83   :  { %v3773_v31 = vpack.c.bf16 %v734_v19, %v727_v17  ;;  %v3779_v51 = vpack.c.bf16 %v762_v57, %v755_v56 }
  0x84   :  { %3738 = vmatpush3.bf16.msra.mxu1 %v3737_v25  ;;  %v784_v47 = vsub.f32 %v782_v21, %v783_v43  ;;  %v4649_v63 = vpack.c.bf16 %v790_v44, %v783_v43  ;;  %v708_v21 = vand.u32 4294901760, %v707_v35  ;;  %v728_v25 = vsub.f32 %v4487_v61, %v727_v17  ;;  %v1248_v61 = vld [vmem:[#allocation7 + $0x80] sm:$0xff] }
  0x85   :  { %3675 = vmatpush3.bf16.msra.mxu0 %v4596_v15  ;;  %3739 = vmatprep.subr.bf16.mxu1 %v4281_v0  ;;  %v715_v43 = vand.u32 4294901760, %v714_v22  ;;  %v722_v44 = vand.u32 4294901760, %v721_v23  ;;  %v1273_v4 = vand.u32 4294901760, %v1248_v61 }
  0x86   :  { %3676 = vmatprep.subr.bf16.mxu0 %v4281_v0  ;;  %v785_v49 = vand.u32 4294901760, %v784_v47  ;;  %v729_v48 = vand.u32 4294901760, %v728_v25  ;;  %v3770_v25 = vpack.c.bf16 %v720_v45, %v713_v39  ;;  %v1257_v45 = vld [vmem:[#allocation7 + $0xc8] sm:$0xff] }
  0x87   :  { %v3698_v54 = vpack.c.bf16 %v722_v44, %v715_v43 }
  0x88   :  { %3741 = vmatpush3.bf16.msra.mxu1 %v3740_v40  ;;  %v4645_v55 = vpack.c.bf16 %v792_v50, %v785_v49  ;;  %v3695_v40 = vpack.c.bf16 %v708_v21, %v701_v20  ;;  %v736_v49 = vand.u32 4294901760, %v735_v27  ;;  %v742_v50 = vsub.f32 %v4501_v3, %v741_v33  ;;  %v1250_v3 = vld [vmem:[#allocation7 + $0x90] sm:$0xff] }
  0x89   :  { %3678 = vmatpush3.bf16.msra.mxu0 %v4606_v10  ;;  %3742 = vmatprep.subr.bf16.mxu1 %v4281_v0  ;;  %v1300_v33 = vand.u32 4294901760, %v1257_v45 }
  0x8a   :  { %3679 = vmatprep.subr.bf16.mxu0 %v4281_v0  ;;  %v3701_v58 = vpack.c.bf16 %v736_v49, %v729_v48  ;;  %v743_v59 = vand.u32 4294901760, %v742_v50  ;;  %v1258_v50 = vld [vmem:[#allocation7 + $0xd0] sm:$0xff] }
  0x8b   :  { %v4815_v44 = vsub.f32 %v1257_v45, %v1300_v33 }
  0x8d   :  { %3681 = vmatpush3.bf16.msra.mxu0 %v4614_v13 }
  0x8e   :  { %3682 = vmatprep.subr.bf16.mxu0 %v4281_v0 }
  0x91   :  { %3684 = vmatpush3.bf16.msra.mxu0 %v4622_v14 }
  0x92   :  { %3685 = vmatprep.subr.bf16.mxu0 %v4281_v0 }
  0x95   :  { %3687 = vmatpush3.bf16.msra.mxu0 %v4631_v32 }
  0x96   :  { %3688 = vmatprep.subr.bf16.mxu0 %v4281_v0 }
  0x99   :  { %3690 = vmatpush3.bf16.msra.mxu0 %v4636_v41 }
  0x9a   :  { %3691 = vmatprep.subr.bf16.mxu0 %v4281_v0 }
  0x9d   :  { %3693 = vmatpush3.bf16.msra.mxu0 %v4641_v42 }
  0x9e   :  { %3694 = vmatprep.subr.bf16.mxu0 %v4281_v0 }
 0x153   :  { %v577_v8 = vpop.f32.mrb[0].mxu0 }
 0x154   :  { %v4102_v9 = vadd.f32 %v2597_v5, %v577_v8  ;;  %v3003_v11 = vpop.f32.mrb[1].mxu0  ;;  %v750_v5 = vand.u32 4294901760, %v749_v53  ;;  %v756_v8 = vsub.f32 %v4523_v12, %v755_v56  ;;  %v1259_v53 = vld [vmem:[#allocation7 + $0xd8] sm:$0xff] }
 0x155   :  { %v769_v11 = vand.u32 4294901760, %v4543_v36  ;;  %v1306_v56 = vand.u32 4294901760, %v1259_v53 }
 0x156   :  { %v581_v29 = vmax.f32 %v4102_v9, 0.0  ;;  %v763_v9 = vsub.f32 %v4528_v28, %v762_v57  ;;  %v3704_v30 = vpack.c.bf16 %v750_v5, %v743_v59  ;;  %v757_v35 = vand.u32 4294901760, %v756_v8  ;;  %v1261_v59 = vld [vmem:[#allocation7 + $0xe8] sm:$0xff] }
 0x157   :  { %v770_v21 = vsub.f32 %v4543_v36, %v769_v11  ;;  %v1312_v8 = vand.u32 4294901760, %v1261_v59 }
 0x158   :  { %v4666_v46 = vand.u32 4294901760, %v581_v29  ;;  %v764_v20 = vand.u32 4294901760, %v763_v9 }
 0x159   :  { %v771_v22 = vand.u32 4294901760, %v770_v21 }
 0x15a   :  { %v4670_v18 = vsub.f32 %v581_v29, %v4666_v46  ;;  %v776_v29 = vand.u32 4294901760, %v4548_v37  ;;  %v3707_v28 = vpack.c.bf16 %v764_v20, %v757_v35 }
 0x15c   :  { %v688_v24 = vand.u32 4294901760, %v4670_v18  ;;  %3107 = vmatmul.mubr.f32.vlgmr.msra.gmra.mrb[0].mxu1 %v4670_v18  ;;  %v777_v12 = vsub.f32 %v4548_v37, %v776_v29  ;;  %v3767_v37 = vpack.c.bf16 %v706_v7, %v699_v6  ;;  %v3782_v52 = vpack.c.bf16 %v776_v29, %v769_v11  ;;  %v1262_v11 = vld [vmem:[#allocation7 + $0xf0] sm:$0xff]  ;;  %v1263_v29 = vld [vmem:[#allocation7 + $0xf8] sm:$0xff] }
 0x15d   :  { %3744 = vmatpush3.bf16.msra.mxu1 %v4587_v16  ;;  %3141 = vmatprep.mubr.msk.f32.mxu1 %vm4282_vm0, %v4283_v1  ;;  %v4793_v6 = vsub.f32 %v1248_v61, %v1273_v4  ;;  %v1318_v35 = vand.u32 4294901760, %v1263_v29 }
 0x15e   :  { %v689_v26 = vsub.f32 %v4670_v18, %v688_v24  ;;  %3745 = vmatprep.subr.bf16.mxu1 %v4281_v0  ;;  %v778_v23 = vand.u32 4294901760, %v777_v12 }
 0x15f   :  { %v1366_v20 = vand.u32 4294901760, %v4793_v6 }
 0x160   :  { %v690_v47 = vand.u32 4294901760, %v689_v26  ;;  %v3710_v36 = vpack.c.bf16 %v778_v23, %v771_v22 }
 0x161   :  { %3747 = vmatpush3.bf16.msra.mxu1 %v4596_v15 }
 0x162   :  { %3037 = vmatmul.mubr.f32.vlgmr.msra.gmra.mrb[2].mxu0 %v690_v47  ;;  %3748 = vmatprep.subr.bf16.mxu1 %v4281_v0 }
 0x163   :  { %3696 = vmatpush3.bf16.msra.mxu0 %v3695_v40  ;;  %3071 = vmatprep.mubr.msk.f32.mxu0 %vm4282_vm0, %v4283_v1 }
 0x164   :  { %3697 = vmatprep.subr.bf16.mxu0 %v4281_v0 }
 0x165   :  { %3750 = vmatpush3.bf16.msra.mxu1 %v4606_v10 }
 0x166   :  { %3751 = vmatprep.subr.bf16.mxu1 %v4281_v0 }
 0x167   :  { %3699 = vmatpush3.bf16.msra.mxu0 %v3698_v54  ;;  %v1303_v54 = vand.u32 4294901760, %v1258_v50 }
 0x168   :  { %3700 = vmatprep.subr.bf16.mxu0 %v4281_v0 }
 0x169   :  { %3753 = vmatpush3.bf16.msra.mxu1 %v4614_v13  ;;  %v4831_v57 = vpack.c.bf16 %v1306_v56, %v1303_v54  ;;  %v4849_v23 = vsub.f32 %v1258_v50, %v1303_v54  ;;  %v5359_v54 = vand.u32 4294901760, %v4815_v44 }
 0x16a   :  { %3754 = vmatprep.subr.bf16.mxu1 %v4281_v0 }
 0x16b   :  { %3702 = vmatpush3.bf16.msra.mxu0 %v3701_v58  ;;  %v1260_v58 = vld [vmem:[#allocation7 + $0xe0] sm:$0xff] }
 0x16c   :  { %3703 = vmatprep.subr.bf16.mxu0 %v4281_v0  ;;  %v1309_v5 = vand.u32 4294901760, %v1260_v58 }
 0x16d   :  { %3756 = vmatpush3.bf16.msra.mxu1 %v4622_v14 }
 0x16e   :  { %3757 = vmatprep.subr.bf16.mxu1 %v4281_v0  ;;  %v4835_v9 = vpack.c.bf16 %v1312_v8, %v1309_v5 }
 0x16f   :  { %3705 = vmatpush3.bf16.msra.mxu0 %v3704_v30  ;;  %v1315_v30 = vand.u32 4294901760, %v1262_v11 }
 0x170   :  { %3706 = vmatprep.subr.bf16.mxu0 %v4281_v0 }
 0x171   :  { %3759 = vmatpush3.bf16.msra.mxu1 %v4631_v32  ;;  %v4841_v12 = vpack.c.bf16 %v1318_v35, %v1315_v30 }
 0x172   :  { %3760 = vmatprep.subr.bf16.mxu1 %v4281_v0 }
 0x173   :  { %3708 = vmatpush3.bf16.msra.mxu0 %v3707_v28  ;;  %v1367_v28 = vsub.f32 %v4793_v6, %v1366_v20 }
 0x174   :  { %3709 = vmatprep.subr.bf16.mxu0 %v4281_v0 }
 0x175   :  { %3762 = vmatpush3.bf16.msra.mxu1 %v4636_v41 }
 0x176   :  { %3763 = vmatprep.subr.bf16.mxu1 %v4281_v0 }
 0x177   :  { %3711 = vmatpush3.bf16.msra.mxu0 %v3710_v36  ;;  %v4851_v36 = vsub.f32 %v1259_v53, %v1306_v56 }
 0x178   :  { %3712 = vmatprep.subr.bf16.mxu0 %v4281_v0 }
 0x179   :  { %3765 = vmatpush3.bf16.msra.mxu1 %v4641_v42 }
 0x17a   :  { %3766 = vmatprep.subr.bf16.mxu1 %v4281_v0 }
 0x17b   :  { %3714 = vmatpush3.bf16.msra.mxu0 %v4645_v55 }
 0x17c   :  { %3142 = vmatmul.mubr.f32.vlgmr.msra.gmra.mrb[0].mxu1 %v688_v24  ;;  %3715 = vmatprep.subr.bf16.mxu0 %v4281_v0 }
 0x17d   :  { %3768 = vmatpush3.bf16.msra.mxu1 %v3767_v37  ;;  %3176 = vmatprep.mubr.msk.f32.mxu1 %vm4282_vm0, %v4283_v1  ;;  %v4853_v37 = vsub.f32 %v1260_v58, %v1309_v5 }
 0x17e   :  { %3769 = vmatprep.subr.bf16.mxu1 %v4281_v0 }
 0x17f   :  { %3717 = vmatpush3.bf16.msra.mxu0 %v4647_v60  ;;  %v1255_v60 = vld [vmem:[#allocation7 + $0xb8] sm:$0xff] }
 0x180   :  { %3814 = vmatprep.subr.bf16.mxu0 %v4281_v0  ;;  %v1294_v26 = vand.u32 4294901760, %v1255_v60 }
 0x181   :  { %3771 = vmatpush3.bf16.msra.mxu1 %v3770_v25  ;;  %v4855_v25 = vsub.f32 %v1261_v59, %v1312_v8  ;;  %v1430_v59 = vsub.f32 %v4815_v44, %v5359_v54 }
 0x182   :  { %3072 = vmatmul.mubr.f32.vlgmr.msra.gmra.mrb[2].mxu0 %v4666_v46  ;;  %3772 = vmatprep.subr.bf16.mxu1 %v4281_v0  ;;  %v4811_v40 = vsub.f32 %v1255_v60, %v1294_v26 }
 0x183   :  { %3246 = vmatprep.mubr.msk.f32.mxu0 %vm4282_vm0, %v4283_v1  ;;  %v1431_v8 = vand.u32 4294901760, %v1430_v59 }
 0x184   :  { %v5361_v45 = vand.u32 4294901760, %v4811_v40 }
 0x185   :  { %3774 = vmatpush3.bf16.msra.mxu1 %v3773_v31  ;;  %v4858_v31 = vsub.f32 %v1262_v11, %v1315_v30  ;;  %v5358_v11 = vand.u32 4294901760, %v4849_v23 }
 0x186   :  { %3775 = vmatprep.subr.bf16.mxu1 %v4281_v0 }
 0x189   :  { %3777 = vmatpush3.bf16.msra.mxu1 %v3776_v38  ;;  %v4860_v38 = vsub.f32 %v1263_v29, %v1318_v35  ;;  %v5357_v29 = vand.u32 4294901760, %v4851_v36  ;;  %v1437_v35 = vsub.f32 %v4849_v23, %v5358_v11 }
 0x18a   :  { %3778 = vmatprep.subr.bf16.mxu1 %v4281_v0 }
 0x18d   :  { %3780 = vmatpush3.bf16.msra.mxu1 %v3779_v51  ;;  %v1368_v51 = vand.u32 4294901760, %v1367_v28  ;;  %v1444_v28 = vsub.f32 %v4851_v36, %v5357_v29 }
 0x18e   :  { %3781 = vmatprep.subr.bf16.mxu1 %v4281_v0 }
 0x191   :  { %3783 = vmatpush3.bf16.msra.mxu1 %v3782_v52 }
 0x192   :  { %3784 = vmatprep.subr.bf16.mxu1 %v4281_v0 }
 0x195   :  { %3786 = vmatpush3.bf16.msra.mxu1 %v4649_v63  ;;  %v1256_v63 = vld [vmem:[#allocation7 + $0xc0] sm:$0xff] }
 0x196   :  { %3787 = vmatprep.subr.bf16.mxu1 %v4281_v0  ;;  %v1297_v27 = vand.u32 4294901760, %v1256_v63 }
 0x198   :  { %v4813_v43 = vsub.f32 %v1256_v63, %v1297_v27  ;;  %v4826_v49 = vpack.c.bf16 %v1300_v33, %v1297_v27  ;;  %v1416_v27 = vsub.f32 %v4811_v40, %v5361_v45 }
 0x199   :  { %3789 = vmatpush3.bf16.msra.mxu1 %v4651_v2 }
 0x19a   :  { %3790 = vmatprep.subr.bf16.mxu1 %v4281_v0  ;;  %v1417_v50 = vand.u32 4294901760, %v1416_v27  ;;  %v5360_v53 = vand.u32 4294901760, %v4813_v43 }
 0x19c   :  { %3177 = vmatmul.mubr.f32.vlgmr.msra.gmra.mrb[0].mxu1 %v4666_v46  ;;  %v1423_v58 = vsub.f32 %v4813_v43, %v5360_v53  ;;  %v1923_v53 = vld [vmem:[#allocation8 + $0x48] sm:$0xff] }
 0x19d   :  { %3792 = vmatpush3.bf16.msra.mxu1 %v4587_v16  ;;  %3211 = vmatprep.mubr.msk.f32.mxu1 %vm4282_vm0, %v4283_v1  ;;  %v1276_v16 = vand.u32 4294901760, %v1249_v62 }
 0x19e   :  { %3793 = vmatprep.subr.bf16.mxu1 %v4281_v0  ;;  %v1424_v5 = vand.u32 4294901760, %v1423_v58 }
 0x19f   :  { %v4791_v2 = vpack.c.bf16 %v1276_v16, %v1273_v4  ;;  %v4795_v7 = vsub.f32 %v1249_v62, %v1276_v16 }
 0x1a0   :  { %v3851_v30 = vpack.c.bf16 %v1431_v8, %v1424_v5 }
 0x1a1   :  { %3795 = vmatpush3.bf16.msra.mxu1 %v4596_v15  ;;  %v1251_v15 = vld [vmem:[#allocation7 + $0x98] sm:$0xff]  ;;  %3816 = vmatpush3.bf16.msra.mxu0 %v4791_v2  ;;  %v1373_v21 = vand.u32 4294901760, %v4795_v7  ;;  %v3863_v5 = vpack.c.bf16 %v4795_v7, %v4793_v6 }
 0x1a2   :  { %3796 = vmatprep.subr.bf16.mxu1 %v4281_v0  ;;  %3817 = vmatprep.subr.bf16.mxu0 %v4281_v0 }
 0x1a3   :  { %v1374_v22 = vsub.f32 %v4795_v7, %v1373_v21 }
 0x1a5   :  { %3798 = vmatpush3.bf16.msra.mxu1 %v4606_v10  ;;  %v1279_v10 = vand.u32 4294901760, %v1250_v3  ;;  %v1375_v52 = vand.u32 4294901760, %v1374_v22  ;;  %v1438_v22 = vand.u32 4294901760, %v1437_v35 }
 0x1a6   :  { %3799 = vmatprep.subr.bf16.mxu1 %v4281_v0 }
 0x1a7   :  { %v4797_v39 = vsub.f32 %v1250_v3, %v1279_v10  ;;  %v4865_v3 = vpack.c.bf16 %v1375_v52, %v1368_v51  ;;  %v1445_v51 = vand.u32 4294901760, %v1444_v28  ;;  %v5356_v52 = vand.u32 4294901760, %v4853_v37 }
 0x1a9   :  { %3801 = vmatpush3.bf16.msra.mxu1 %v4614_v13  ;;  %v1252_v13 = vld [vmem:[#allocation7 + $0xa0] sm:$0xff]  ;;  %v1380_v61 = vand.u32 4294901760, %v4797_v39 }
 0x1aa   :  { %3802 = vmatprep.subr.bf16.mxu1 %v4281_v0 }
 0x1ab   :  { %v1381_v4 = vsub.f32 %v4797_v39, %v1380_v61 }
 0x1ad   :  { %3804 = vmatpush3.bf16.msra.mxu1 %v4622_v14  ;;  %v1253_v14 = vld [vmem:[#allocation7 + $0xa8] sm:$0xff] }
 0x1ae   :  { %3805 = vmatprep.subr.bf16.mxu1 %v4281_v0  ;;  %v1288_v55 = vand.u32 4294901760, %v1253_v14 }
 0x1b0   :  { %v4806_v19 = vsub.f32 %v1253_v14, %v1288_v55 }
 0x1b1   :  { %3807 = vmatpush3.bf16.msra.mxu1 %v4631_v32  ;;  %v1282_v32 = vand.u32 4294901760, %v1251_v15 }
 0x1b2   :  { %3808 = vmatprep.subr.bf16.mxu1 %v4281_v0  ;;  %v5370_v7 = vand.u32 4294901760, %v4806_v19 }
 0x1b3   :  { %v4801_v17 = vsub.f32 %v1251_v15, %v1282_v32 }
 0x1b5   :  { %3810 = vmatpush3.bf16.msra.mxu1 %v4636_v41  ;;  %v1285_v41 = vand.u32 4294901760, %v1252_v13  ;;  %v1387_v62 = vand.u32 4294901760, %v4801_v17  ;;  %v3866_v8 = vpack.c.bf16 %v4801_v17, %v4797_v39  ;;  %v5372_v39 = vand.u32 4294901760, %v4811_v40 }
 0x1b6   :  { %3811 = vmatprep.subr.bf16.mxu1 %v4281_v0 }
 0x1b7   :  { %v4803_v18 = vsub.f32 %v1252_v13, %v1285_v41  ;;  %v4818_v47 = vpack.c.bf16 %v1288_v55, %v1285_v41  ;;  %v1388_v16 = vsub.f32 %v4801_v17, %v1387_v62  ;;  %v1382_v13 = vand.u32 4294901760, %v1381_v4 }
 0x1b8   :  { %v5355_v4 = vand.u32 4294901760, %v4855_v25 }
 0x1b9   :  { %3813 = vmatpush3.bf16.msra.mxu1 %v4641_v42  ;;  %v1254_v42 = vld [vmem:[#allocation7 + $0xb0] sm:$0xff]  ;;  %v5364_v15 = vand.u32 4294901760, %v4803_v18  ;;  %v1389_v14 = vand.u32 4294901760, %v1388_v16  ;;  %v3854_v16 = vpack.c.bf16 %v1445_v51, %v1438_v22  ;;  %v3869_v35 = vpack.c.bf16 %v4806_v19, %v4803_v18 }
 0x1ba   :  { %3958 = vmatprep.subr.bf16.mxu1 %v4281_v0  ;;  %v1291_v24 = vand.u32 4294901760, %v1254_v42  ;;  %v3875_v22 = vpack.c.bf16 %v4815_v44, %v4813_v43  ;;  %v3878_v51 = vpack.c.bf16 %v4851_v36, %v4849_v23  ;;  %v5369_v6 = vand.u32 4294901760, %v4803_v18 }
 0x1bb   :  { %v4881_v55 = vpack.c.bf16 %v1389_v14, %v1382_v13  ;;  %v1451_v13 = vsub.f32 %v4853_v37, %v5356_v52  ;;  %v1458_v14 = vsub.f32 %v4855_v25, %v5355_v4 }
 0x1bc   :  { %3212 = vmatmul.mubr.f32.vlgmr.msra.gmra.mrb[0].mxu1 %v4666_v46  ;;  %v4799_v46 = vpack.c.bf16 %v1282_v32, %v1279_v10  ;;  %v4809_v34 = vsub.f32 %v1254_v42, %v1291_v24  ;;  %v4822_v48 = vpack.c.bf16 %v1294_v26, %v1291_v24  ;;  %v5363_v10 = vand.u32 4294901760, %v4806_v19 }
 0x1bd   :  { %3456 = vmatprep.mubr.msk.f32.mxu1 %vm4282_vm0, %v4283_v1  ;;  %v1395_v32 = vsub.f32 %v4803_v18, %v5364_v15  ;;  %v5375_v18 = vand.u32 4294901760, %v4849_v23 }
 0x1be   :  { %3819 = vmatpush3.bf16.msra.mxu0 %v4799_v46  ;;  %v1402_v41 = vsub.f32 %v4806_v19, %v5363_v10  ;;  %v5362_v63 = vand.u32 4294901760, %v4809_v34  ;;  %v3872_v28 = vpack.c.bf16 %v4811_v40, %v4809_v34  ;;  %v5376_v19 = vand.u32 4294901760, %v4851_v36  ;;  %v1927_v36 = vld [vmem:[#allocation8 + $0x68] sm:$0xff] }
 0x1bf   :  { %3820 = vmatprep.subr.bf16.mxu0 %v4281_v0  ;;  %v1396_v42 = vand.u32 4294901760, %v1395_v32  ;;  %v1452_v32 = vand.u32 4294901760, %v1451_v13  ;;  %v3881_v13 = vpack.c.bf16 %v4855_v25, %v4853_v37  ;;  %v5378_v40 = vand.u32 4294901760, %v4855_v25  ;;  %v1928_v25 = vld [vmem:[#allocation8 + $0x70] sm:$0xff] }
 0x1c0   :  { %v1403_v60 = vand.u32 4294901760, %v1402_v41  ;;  %v1409_v26 = vsub.f32 %v4809_v34, %v5362_v63  ;;  %v1459_v41 = vand.u32 4294901760, %v1458_v14 }
 0x1c2   :  { %3822 = vmatpush3.bf16.msra.mxu0 %v4818_v47  ;;  %v3845_v24 = vpack.c.bf16 %v1403_v60, %v1396_v42  ;;  %v1410_v33 = vand.u32 4294901760, %v1409_v26  ;;  %v5354_v42 = vand.u32 4294901760, %v4858_v31  ;;  %v5353_v60 = vand.u32 4294901760, %v4860_v38 }
 0x1c3   :  { %3823 = vmatprep.subr.bf16.mxu0 %v4281_v0  ;;  %v3857_v26 = vpack.c.bf16 %v1459_v41, %v1452_v32  ;;  %v3884_v41 = vpack.c.bf16 %v4860_v38, %v4858_v31 }
 0x1c4   :  { %v3848_v56 = vpack.c.bf16 %v1417_v50, %v1410_v33  ;;  %v1465_v27 = vsub.f32 %v4858_v31, %v5354_v42  ;;  %v1472_v33 = vsub.f32 %v4860_v38, %v5353_v60 }
 0x1c6   :  { %3825 = vmatpush3.bf16.msra.mxu0 %v4822_v48  ;;  %v1466_v50 = vand.u32 4294901760, %v1465_v27  ;;  %v1473_v58 = vand.u32 4294901760, %v1472_v33  ;;  %v2598_v27 = vld [vmem:[%s5349_s4] ss:$0 sm:$0xff] }
 0x1c7   :  { %3826 = vmatprep.subr.bf16.mxu0 %v4281_v0 }
 0x1c8   :  { %v3860_v59 = vpack.c.bf16 %v1473_v58, %v1466_v50 }
 0x1ca   :  { %3828 = vmatpush3.bf16.msra.mxu0 %v4826_v49 }
 0x1cb   :  { %3829 = vmatprep.subr.bf16.mxu0 %v4281_v0 }
 0x1ce   :  { %3831 = vmatpush3.bf16.msra.mxu0 %v4831_v57 }
 0x1cf   :  { %3832 = vmatprep.subr.bf16.mxu0 %v4281_v0 }
 0x1d2   :  { %3834 = vmatpush3.bf16.msra.mxu0 %v4835_v9 }
 0x1d3   :  { %3835 = vmatprep.subr.bf16.mxu0 %v4281_v0 }
 0x1d6   :  { %3837 = vmatpush3.bf16.msra.mxu0 %v4841_v12 }
 0x1d7   :  { %3838 = vmatprep.subr.bf16.mxu0 %v4281_v0 }
 0x255   :  { %v843_v14 = vpop.f32.mrb[2].mxu0 }
 0x256   :  { %v3073_v32 = vpop.f32.mrb[3].mxu0  ;;  %v4103_v33 = vadd.f32 %v2598_v27, %v843_v14  ;;  %v1920_v27 = vld [vmem:[#allocation8 + $0x30] sm:$0xff] }
 0x28f   :  { %v1242_v50 = vpop.f32.mrb[0].mxu1 }
 0x290   :  { %v4104_v58 = vadd.f32 %v4103_v33, %v1242_v50  ;;  %v3213_v60 = vpop.f32.mrb[1].mxu1  ;;  %v1921_v33 = vld [vmem:[#allocation8 + $0x38] sm:$0xff]  ;;  %v1922_v50 = vld [vmem:[#allocation8 + $0x40] sm:$0xff] }
 0x291   :  { %v1919_v60 = vld [vmem:[#allocation8 + $0x28] sm:$0xff] }
 0x292   :  { %v1246_v42 = vmax.f32 %v4104_v58, 0.0  ;;  %v1953_v14 = vand.u32 4294901760, %v1919_v60 }
 0x294   :  { %v4942_v4 = vand.u32 4294901760, %v1246_v42  ;;  %v4985_v15 = vsub.f32 %v1919_v60, %v1953_v14 }
 0x296   :  { %v4945_v52 = vsub.f32 %v1246_v42, %v4942_v4  ;;  %v1918_v42 = vld [vmem:[#allocation8 + $0x20] sm:$0xff] }
 0x298   :  { %v1355_v29 = vand.u32 4294901760, %v4945_v52 }
 0x29a   :  { %v1356_v32 = vsub.f32 %v4945_v52, %v1355_v29 }
 0x29c   :  { %v1357_v11 = vand.u32 4294901760, %v1356_v32 }
 0x29e   :  { %3247 = vmatmul.mubr.f32.vlgmr.msra.gmra.mrb[4].mxu0 %v1357_v11 }
 0x29f   :  { %3840 = vmatpush3.bf16.msra.mxu0 %v4865_v3  ;;  %3281 = vmatprep.mubr.msk.f32.mxu0 %vm4282_vm0, %v4283_v1  ;;  %v1914_v3 = vld [vmem:[#allocation8] sm:$0xff] }
 0x2a0   :  { %3841 = vmatprep.subr.bf16.mxu0 %v4281_v0 }
 0x2a3   :  { %3843 = vmatpush3.bf16.msra.mxu0 %v4881_v55  ;;  %v1915_v55 = vld [vmem:[#allocation8 + $0x8] sm:$0xff] }
 0x2a4   :  { %3844 = vmatprep.subr.bf16.mxu0 %v4281_v0  ;;  %v1941_v11 = vand.u32 4294901760, %v1915_v55 }
 0x2a6   :  { %v4971_v32 = vsub.f32 %v1915_v55, %v1941_v11  ;;  %v1959_v55 = vand.u32 4294901760, %v1921_v33 }
 0x2a7   :  { %3846 = vmatpush3.bf16.msra.mxu0 %v3845_v24  ;;  %v1916_v24 = vld [vmem:[#allocation8 + $0x10] sm:$0xff] }
 0x2a8   :  { %3847 = vmatprep.subr.bf16.mxu0 %v4281_v0 }
 0x2ab   :  { %3849 = vmatpush3.bf16.msra.mxu0 %v3848_v56  ;;  %v1938_v56 = vand.u32 4294901760, %v1914_v3 }
 0x2ac   :  { %3850 = vmatprep.subr.bf16.mxu0 %v4281_v0 }
 0x2ad   :  { %v4967_v58 = vpack.c.bf16 %v1941_v11, %v1938_v56 }
 0x2af   :  { %3852 = vmatpush3.bf16.msra.mxu0 %v3851_v30  ;;  %v1917_v30 = vld [vmem:[#allocation8 + $0x18] sm:$0xff]  ;;  %3960 = vmatpush3.bf16.msra.mxu1 %v4967_v58 }
 0x2b0   :  { %3853 = vmatprep.subr.bf16.mxu0 %v4281_v0  ;;  %3961 = vmatprep.subr.bf16.mxu1 %v4281_v0 }
 0x2b3   :  { %3855 = vmatpush3.bf16.msra.mxu0 %v3854_v16  ;;  %v1944_v16 = vand.u32 4294901760, %v1916_v24 }
 0x2b4   :  { %3856 = vmatprep.subr.bf16.mxu0 %v4281_v0 }
 0x2b5   :  { %v4973_v54 = vsub.f32 %v1916_v24, %v1944_v16  ;;  %v1965_v24 = vand.u32 4294901760, %v1923_v53 }
 0x2b7   :  { %3858 = vmatpush3.bf16.msra.mxu0 %v3857_v26  ;;  %v1947_v26 = vand.u32 4294901760, %v1917_v30 }
 0x2b8   :  { %3859 = vmatprep.subr.bf16.mxu0 %v4281_v0 }
 0x2b9   :  { %v4975_v45 = vpack.c.bf16 %v1947_v26, %v1944_v16  ;;  %v4977_v63 = vsub.f32 %v1917_v30, %v1947_v26  ;;  %v4991_v30 = vsub.f32 %v1921_v33, %v1959_v55 }
 0x2bb   :  { %3861 = vmatpush3.bf16.msra.mxu0 %v3860_v59  ;;  %v1950_v59 = vand.u32 4294901760, %v1918_v42  ;;  %3963 = vmatpush3.bf16.msra.mxu1 %v4975_v45 }
 0x2bc   :  { %3862 = vmatprep.subr.bf16.mxu0 %v4281_v0  ;;  %3964 = vmatprep.subr.bf16.mxu1 %v4281_v0 }
 0x2bd   :  { %v4979_v10 = vsub.f32 %v1918_v42, %v1950_v59  ;;  %v4995_v42 = vsub.f32 %v1923_v53, %v1965_v24 }
 0x2be   :  { %3282 = vmatmul.mubr.f32.vlgmr.msra.gmra.mrb[4].mxu0 %v4942_v4 }
 0x2bf   :  { %3864 = vmatpush3.bf16.msra.mxu0 %v3863_v5  ;;  %3316 = vmatprep.mubr.msk.f32.mxu0 %vm4282_vm0, %v4283_v1  ;;  %v4969_v5 = vsub.f32 %v1914_v3, %v1938_v56  ;;  %v1956_v3 = vand.u32 4294901760, %v1920_v27  ;;  %v1962_v56 = vand.u32 4294901760, %v1922_v50 }
 0x2c0   :  { %3865 = vmatprep.subr.bf16.mxu0 %v4281_v0 }
 0x2c1   :  { %v4989_v11 = vsub.f32 %v1920_v27, %v1956_v3  ;;  %v4993_v16 = vsub.f32 %v1922_v50, %v1962_v56  ;;  %v5009_v53 = vpack.c.bf16 %v1959_v55, %v1956_v3 }
 0x2c3   :  { %3867 = vmatpush3.bf16.msra.mxu0 %v3866_v8  ;;  %v5001_v8 = vpack.c.bf16 %v1953_v14, %v1950_v59 }
 0x2c4   :  { %3868 = vmatprep.subr.bf16.mxu0 %v4281_v0 }
 0x2c5   :  { %3966 = vmatpush3.bf16.msra.mxu1 %v5001_v8 }
 0x2c6   :  { %3967 = vmatprep.subr.bf16.mxu1 %v4281_v0 }
 0x2c7   :  { %3870 = vmatpush3.bf16.msra.mxu0 %v3869_v35  ;;  %v5017_v35 = vpack.c.bf16 %v1965_v24, %v1962_v56 }
 0x2c8   :  { %3871 = vmatprep.subr.bf16.mxu0 %v4281_v0 }
 0x2c9   :  { %3969 = vmatpush3.bf16.msra.mxu1 %v5009_v53 }
 0x2ca   :  { %3970 = vmatprep.subr.bf16.mxu1 %v4281_v0 }
 0x2cb   :  { %3873 = vmatpush3.bf16.msra.mxu0 %v3872_v28  ;;  %v3911_v28 = vpack.c.bf16 %v1373_v21, %v1366_v20  ;;  %v3917_v20 = vpack.c.bf16 %v5370_v7, %v5369_v6  ;;  %v5371_v21 = vand.u32 4294901760, %v4809_v34  ;;  %v5377_v34 = vand.u32 4294901760, %v4853_v37 }
 0x2cc   :  { %3874 = vmatprep.subr.bf16.mxu0 %v4281_v0  ;;  %v1977_v37 = vand.u32 4294901760, %v1927_v36 }
 0x2cd   :  { %3972 = vmatpush3.bf16.msra.mxu1 %v5017_v35  ;;  %v3920_v17 = vpack.c.bf16 %v5372_v39, %v5371_v21  ;;  %v2059_v21 = vand.u32 4294901760, %v4979_v10  ;;  %v2066_v39 = vand.u32 4294901760, %v4985_v15 }
 0x2ce   :  { %3973 = vmatprep.subr.bf16.mxu1 %v4281_v0  ;;  %v5141_v50 = vsub.f32 %v1927_v36, %v1977_v37 }
 0x2cf   :  { %3876 = vmatpush3.bf16.msra.mxu0 %v3875_v22  ;;  %v3914_v22 = vpack.c.bf16 %v1387_v62, %v1380_v61  ;;  %v5373_v61 = vand.u32 4294901760, %v4813_v43  ;;  %v5374_v62 = vand.u32 4294901760, %v4815_v44  ;;  %v5379_v43 = vand.u32 4294901760, %v4858_v31 }
 0x2d0   :  { %3877 = vmatprep.subr.bf16.mxu0 %v4281_v0  ;;  %v5380_v44 = vand.u32 4294901760, %v4860_v38  ;;  %v1980_v31 = vand.u32 4294901760, %v1928_v25 }
 0x2d2   :  { %v5144_v3 = vsub.f32 %v1928_v25, %v1980_v31 }
 0x2d3   :  { %3879 = vmatpush3.bf16.msra.mxu0 %v3878_v51  ;;  %v3929_v51 = vpack.c.bf16 %v5378_v40, %v5377_v34  ;;  %v2073_v34 = vand.u32 4294901760, %v4989_v11  ;;  %v2080_v40 = vand.u32 4294901760, %v4991_v30 }
 0x2d4   :  { %3880 = vmatprep.subr.bf16.mxu0 %v4281_v0 }
 0x2d7   :  { %3882 = vmatpush3.bf16.msra.mxu0 %v3881_v13  ;;  %v3932_v13 = vpack.c.bf16 %v5380_v44, %v5379_v43  ;;  %v2074_v43 = vsub.f32 %v4989_v11, %v2073_v34  ;;  %v2081_v44 = vsub.f32 %v4991_v30, %v2080_v40 }
 0x2d8   :  { %3883 = vmatprep.subr.bf16.mxu0 %v4281_v0 }
 0x2db   :  { %3885 = vmatpush3.bf16.msra.mxu0 %v3884_v41  ;;  %v2038_v41 = vand.u32 4294901760, %v4971_v32 }
 0x2dc   :  { %3886 = vmatprep.subr.bf16.mxu0 %v4281_v0 }
 0x2dd   :  { %v2039_v59 = vsub.f32 %v4971_v32, %v2038_v41 }
 0x2de   :  { %3317 = vmatmul.mubr.f32.vlgmr.msra.gmra.mrb[4].mxu0 %v4945_v52  ;;  %v3926_v52 = vpack.c.bf16 %v5376_v19, %v5375_v18 }
 0x2df   :  { %3888 = vmatpush3.bf16.msra.mxu0 %v4791_v2  ;;  %3351 = vmatprep.mubr.msk.f32.mxu0 %vm4282_vm0, %v4283_v1  ;;  %v2040_v24 = vand.u32 4294901760, %v2039_v59 }
 0x2e0   :  { %3889 = vmatprep.subr.bf16.mxu0 %v4281_v0 }
 0x2e3   :  { %3891 = vmatpush3.bf16.msra.mxu0 %v4799_v46 }
 0x2e4   :  { %3892 = vmatprep.subr.bf16.mxu0 %v4281_v0 }
 0x2e7   :  { %3894 = vmatpush3.bf16.msra.mxu0 %v4818_v47 }
 0x2e8   :  { %3895 = vmatprep.subr.bf16.mxu0 %v4281_v0 }
 0x2eb   :  { %3897 = vmatpush3.bf16.msra.mxu0 %v4822_v48 }
 0x2ec   :  { %3898 = vmatprep.subr.bf16.mxu0 %v4281_v0 }
 0x2ef   :  { %3900 = vmatpush3.bf16.msra.mxu0 %v4826_v49 }
 0x2f0   :  { %3901 = vmatprep.subr.bf16.mxu0 %v4281_v0 }
 0x2f3   :  { %3903 = vmatpush3.bf16.msra.mxu0 %v4831_v57 }
 0x2f4   :  { %3904 = vmatprep.subr.bf16.mxu0 %v4281_v0 }
 0x2f7   :  { %3906 = vmatpush3.bf16.msra.mxu0 %v4835_v9 }
 0x2f8   :  { %3907 = vmatprep.subr.bf16.mxu0 %v4281_v0 }
 0x2fb   :  { %3909 = vmatpush3.bf16.msra.mxu0 %v4841_v12 }
 0x2fc   :  { %3910 = vmatprep.subr.bf16.mxu0 %v4281_v0 }
 0x2fe   :  { %3352 = vmatmul.mubr.f32.vlgmr.msra.gmra.mrb[4].mxu0 %v1355_v29  ;;  %v3923_v29 = vpack.c.bf16 %v5374_v62, %v5373_v61  ;;  %v2060_v62 = vsub.f32 %v4979_v10, %v2059_v21 }
 0x2ff   :  { %3912 = vmatpush3.bf16.msra.mxu0 %v3911_v28  ;;  %3386 = vmatprep.mubr.msk.f32.mxu0 %vm4282_vm0, %v4283_v1  ;;  %v2045_v28 = vand.u32 4294901760, %v4973_v54 }
 0x300   :  { %3913 = vmatprep.subr.bf16.mxu0 %v4281_v0  ;;  %v2061_v19 = vand.u32 4294901760, %v2060_v62 }
 0x301   :  { %v2046_v7 = vsub.f32 %v4973_v54, %v2045_v28 }
 0x303   :  { %3915 = vmatpush3.bf16.msra.mxu0 %v3914_v22  ;;  %v2052_v22 = vand.u32 4294901760, %v4977_v63 }
 0x304   :  { %3916 = vmatprep.subr.bf16.mxu0 %v4281_v0 }
 0x307   :  { %3918 = vmatpush3.bf16.msra.mxu0 %v3917_v20  ;;  %v2053_v20 = vsub.f32 %v4977_v63, %v2052_v22 }
 0x308   :  { %3919 = vmatprep.subr.bf16.mxu0 %v4281_v0 }
 0x309   :  { %v2054_v61 = vand.u32 4294901760, %v2053_v20 }
 0x30b   :  { %3921 = vmatpush3.bf16.msra.mxu0 %v3920_v17  ;;  %v2047_v17 = vand.u32 4294901760, %v2046_v7  ;;  %v5367_v7 = vand.u32 4294901760, %v5141_v50 }
 0x30c   :  { %3922 = vmatprep.subr.bf16.mxu0 %v4281_v0 }
 0x30d   :  { %v3986_v18 = vpack.c.bf16 %v2054_v61, %v2047_v17  ;;  %v2123_v61 = vsub.f32 %v5141_v50, %v5367_v7 }
 0x30f   :  { %3924 = vmatpush3.bf16.msra.mxu0 %v3923_v29  ;;  %v2067_v29 = vsub.f32 %v4985_v15, %v2066_v39 }
 0x310   :  { %3925 = vmatprep.subr.bf16.mxu0 %v4281_v0 }
 0x313   :  { %3927 = vmatpush3.bf16.msra.mxu0 %v3926_v52  ;;  %v2068_v52 = vand.u32 4294901760, %v2067_v29  ;;  %v2124_v29 = vand.u32 4294901760, %v2123_v61 }
 0x314   :  { %3928 = vmatprep.subr.bf16.mxu0 %v4281_v0 }
 0x317   :  { %3930 = vmatpush3.bf16.msra.mxu0 %v3929_v51  ;;  %v3989_v51 = vpack.c.bf16 %v2068_v52, %v2061_v19  ;;  %v5366_v19 = vand.u32 4294901760, %v5144_v3 }
 0x318   :  { %3931 = vmatprep.subr.bf16.mxu0 %v4281_v0 }
 0x31b   :  { %3933 = vmatpush3.bf16.msra.mxu0 %v3932_v13  ;;  %v2075_v13 = vand.u32 4294901760, %v2074_v43 }
 0x31c   :  { %3934 = vmatprep.subr.bf16.mxu0 %v4281_v0 }
 0x31e   :  { %3387 = vmatmul.mubr.f32.vlgmr.msra.gmra.mrb[4].mxu0 %v4942_v4 }
 0x31f   :  { %3936 = vmatpush3.bf16.msra.mxu0 %v4791_v2  ;;  %3421 = vmatprep.mubr.msk.f32.mxu0 %vm4282_vm0, %v4283_v1  ;;  %v1924_v2 = vld [vmem:[#allocation8 + $0x50] sm:$0xff] }
 0x320   :  { %3937 = vmatprep.subr.bf16.mxu0 %v4281_v0 }
 0x323   :  { %3939 = vmatpush3.bf16.msra.mxu0 %v4799_v46  ;;  %v1925_v46 = vld [vmem:[#allocation8 + $0x58] sm:$0xff] }
 0x324   :  { %3940 = vmatprep.subr.bf16.mxu0 %v4281_v0 }
 0x327   :  { %3942 = vmatpush3.bf16.msra.mxu0 %v4818_v47  ;;  %v1968_v47 = vand.u32 4294901760, %v1924_v2 }
 0x328   :  { %3943 = vmatprep.subr.bf16.mxu0 %v4281_v0 }
 0x329   :  { %v5135_v14 = vsub.f32 %v1924_v2, %v1968_v47  ;;  %v2082_v2 = vand.u32 4294901760, %v2081_v44  ;;  %v2130_v44 = vsub.f32 %v5144_v3, %v5366_v19 }
 0x32b   :  { %3945 = vmatpush3.bf16.msra.mxu0 %v4822_v48  ;;  %v1971_v48 = vand.u32 4294901760, %v1925_v46  ;;  %v2101_v25 = vand.u32 4294901760, %v5135_v14 }
 0x32c   :  { %3946 = vmatprep.subr.bf16.mxu0 %v4281_v0 }
 0x32d   :  { %v5117_v23 = vpack.c.bf16 %v1971_v48, %v1968_v47  ;;  %v5137_v27 = vsub.f32 %v1925_v46, %v1971_v48  ;;  %v2087_v46 = vand.u32 4294901760, %v4993_v16  ;;  %v2094_v47 = vand.u32 4294901760, %v4995_v42 }
 0x32e   :  { %v3992_v48 = vpack.c.bf16 %v2082_v2, %v2075_v13  ;;  %v2131_v2 = vand.u32 4294901760, %v2130_v44 }
 0x32f   :  { %3948 = vmatpush3.bf16.msra.mxu0 %v4826_v49  ;;  %v1926_v49 = vld [vmem:[#allocation8 + $0x60] sm:$0xff]  ;;  %3975 = vmatpush3.bf16.msra.mxu1 %v5117_v23  ;;  %v2095_v36 = vsub.f32 %v4995_v42, %v2094_v47 }
 0x330   :  { %3949 = vmatprep.subr.bf16.mxu0 %v4281_v0  ;;  %3976 = vmatprep.subr.bf16.mxu1 %v4281_v0 }
 0x333   :  { %3951 = vmatpush3.bf16.msra.mxu0 %v4831_v57  ;;  %v1974_v57 = vand.u32 4294901760, %v1926_v49 }
 0x334   :  { %3952 = vmatprep.subr.bf16.mxu0 %v4281_v0 }
 0x335   :  { %v5139_v33 = vsub.f32 %v1926_v49, %v1974_v57  ;;  %v2088_v49 = vsub.f32 %v4993_v16, %v2087_v46 }
 0x337   :  { %3954 = vmatpush3.bf16.msra.mxu0 %v4835_v9  ;;  %v5121_v9 = vpack.c.bf16 %v1977_v37, %v1974_v57  ;;  %v2089_v57 = vand.u32 4294901760, %v2088_v49  ;;  %v2096_v37 = vand.u32 4294901760, %v2095_v36 }
 0x338   :  { %3955 = vmatprep.subr.bf16.mxu0 %v4281_v0 }
 0x339   :  { %3978 = vmatpush3.bf16.msra.mxu1 %v5121_v9 }
 0x33a   :  { %3979 = vmatprep.subr.bf16.mxu1 %v4281_v0 }
 0x33b   :  { %3957 = vmatpush3.bf16.msra.mxu0 %v4841_v12  ;;  %v1929_v12 = vld [vmem:[#allocation8 + $0x78] sm:$0xff] }
 0x33c   :  { %v1983_v38 = vand.u32 4294901760, %v1929_v12 }
 0x33e   :  { %3422 = vmatmul.mubr.f32.vlgmr.msra.gmra.mrb[4].mxu0 %v4942_v4  ;;  %v2031_v4 = vand.u32 4294901760, %v4969_v5  ;;  %v5127_v60 = vpack.c.bf16 %v1983_v38, %v1980_v31  ;;  %v5146_v55 = vsub.f32 %v1929_v12, %v1983_v38  ;;  %v2108_v12 = vand.u32 4294901760, %v5137_v27 }
 0x33f   :  { %v3995_v31 = vpack.c.bf16 %v2096_v37, %v2089_v57  ;;  %v2102_v38 = vsub.f32 %v5135_v14, %v2101_v25  ;;  %v4007_v57 = vpack.c.bf16 %v4971_v32, %v4969_v5  ;;  %v4010_v37 = vpack.c.bf16 %v4977_v63, %v4973_v54 }
 0x340   :  { %v2032_v26 = vsub.f32 %v4969_v5, %v2031_v4  ;;  %3981 = vmatpush3.bf16.msra.mxu1 %v5127_v60  ;;  %v5365_v52 = vand.u32 4294901760, %v5146_v55  ;;  %v4028_v61 = vpack.c.bf16 %v5146_v55, %v5144_v3  ;;  %v4061_v5 = vpack.c.bf16 %v2066_v39, %v2059_v21 }
 0x341   :  { %3982 = vmatprep.subr.bf16.mxu1 %v4281_v0  ;;  %v2103_v59 = vand.u32 4294901760, %v2102_v38  ;;  %v4013_v38 = vpack.c.bf16 %v4985_v15, %v4979_v10  ;;  %v4064_v63 = vpack.c.bf16 %v2080_v40, %v2073_v34  ;;  %v4067_v54 = vpack.c.bf16 %v2094_v47, %v2087_v46 }
 0x342   :  { %v2033_v56 = vand.u32 4294901760, %v2032_v26  ;;  %v2109_v26 = vsub.f32 %v5137_v27, %v2108_v12  ;;  %v2137_v13 = vsub.f32 %v5146_v55, %v5365_v52  ;;  %v4070_v15 = vpack.c.bf16 %v2108_v12, %v2101_v25 }
 0x343   :  { %v5381_v10 = vand.u32 4294901760, %v5139_v33  ;;  %v5382_v32 = vand.u32 4294901760, %v5141_v50 }
 0x344   :  { %v5151_v6 = vpack.c.bf16 %v2040_v24, %v2033_v56  ;;  %v2110_v56 = vand.u32 4294901760, %v2109_v26  ;;  %v5368_v24 = vand.u32 4294901760, %v5139_v33  ;;  %v2138_v49 = vand.u32 4294901760, %v2137_v13 }
 0x345   :  { %v4016_v26 = vpack.c.bf16 %v4991_v30, %v4989_v11  ;;  %v4073_v11 = vpack.c.bf16 %v5382_v32, %v5381_v10  ;;  %v5383_v30 = vand.u32 4294901760, %v5144_v3 }
 0x346   :  { %v3998_v20 = vpack.c.bf16 %v2110_v56, %v2103_v59  ;;  %v2116_v17 = vsub.f32 %v5139_v33, %v5368_v24  ;;  %v4004_v36 = vpack.c.bf16 %v2138_v49, %v2131_v2  ;;  %v4019_v59 = vpack.c.bf16 %v4995_v42, %v4993_v16 }
 0x347   :  { %v4022_v56 = vpack.c.bf16 %v5137_v27, %v5135_v14  ;;  %v5384_v16 = vand.u32 4294901760, %v5146_v55 }
 0x348   :  { %v2117_v62 = vand.u32 4294901760, %v2116_v17  ;;  %v4025_v17 = vpack.c.bf16 %v5141_v50, %v5139_v33 }
 0x349   :  { %v4076_v42 = vpack.c.bf16 %v5384_v16, %v5383_v30 }
 0x34a   :  { %v4001_v43 = vpack.c.bf16 %v2124_v29, %v2117_v62  ;;  %v2600_v62 = vld [vmem:[%s5349_s4 + $0x1] ss:$0 sm:$0xff] }
 0x411   :  { %v1909_v29 = vpop.f32.mrb[4].mxu0 }
 0x412   :  { %v4105_v44 = vadd.f32 %v2600_v62, %v1909_v29  ;;  %v3423_v13 = vpop.f32.mrb[5].mxu0 }
 0x414   :  { %v1913_v2 = vmax.f32 %v4105_v44, 0.0 }
 0x416   :  { %v5226_v49 = vand.u32 4294901760, %v1913_v2 }
 0x418   :  { %v2019_v52 = vsub.f32 %v1913_v2, %v5226_v49 }
 0x41a   :  { %v2020_v19 = vand.u32 4294901760, %v2019_v52 }
 0x41c   :  { %v2021_v7 = vsub.f32 %v2019_v52, %v2020_v19 }
 0x41e   :  { %v2022_v24 = vand.u32 4294901760, %v2021_v7 }
 0x420   :  { %3457 = vmatmul.mubr.f32.vlgmr.msra.gmra.mrb[2].mxu1 %v2022_v24 }
 0x421   :  { %3984 = vmatpush3.bf16.msra.mxu1 %v5151_v6  ;;  %3491 = vmatprep.mubr.msk.f32.mxu1 %vm4282_vm0, %v4283_v1  ;;  %v4055_v6 = vpack.c.bf16 %v2038_v41, %v2031_v4 }
 0x422   :  { %3985 = vmatprep.subr.bf16.mxu1 %v4281_v0 }
 0x425   :  { %3987 = vmatpush3.bf16.msra.mxu1 %v3986_v18  ;;  %v4058_v18 = vpack.c.bf16 %v2052_v22, %v2045_v28 }
 0x426   :  { %3988 = vmatprep.subr.bf16.mxu1 %v4281_v0 }
 0x429   :  { %3990 = vmatpush3.bf16.msra.mxu1 %v3989_v51 }
 0x42a   :  { %3991 = vmatprep.subr.bf16.mxu1 %v4281_v0 }
 0x42d   :  { %3993 = vmatpush3.bf16.msra.mxu1 %v3992_v48 }
 0x42e   :  { %3994 = vmatprep.subr.bf16.mxu1 %v4281_v0 }
 0x431   :  { %3996 = vmatpush3.bf16.msra.mxu1 %v3995_v31 }
 0x432   :  { %3997 = vmatprep.subr.bf16.mxu1 %v4281_v0 }
 0x435   :  { %3999 = vmatpush3.bf16.msra.mxu1 %v3998_v20 }
 0x436   :  { %4000 = vmatprep.subr.bf16.mxu1 %v4281_v0 }
 0x439   :  { %4002 = vmatpush3.bf16.msra.mxu1 %v4001_v43 }
 0x43a   :  { %4003 = vmatprep.subr.bf16.mxu1 %v4281_v0 }
 0x43d   :  { %4005 = vmatpush3.bf16.msra.mxu1 %v4004_v36 }
 0x43e   :  { %4006 = vmatprep.subr.bf16.mxu1 %v4281_v0 }
 0x440   :  { %3492 = vmatmul.mubr.f32.vlgmr.msra.gmra.mrb[2].mxu1 %v5226_v49 }
 0x441   :  { %4008 = vmatpush3.bf16.msra.mxu1 %v4007_v57  ;;  %3526 = vmatprep.mubr.msk.f32.mxu1 %vm4282_vm0, %v4283_v1 }
 0x442   :  { %4009 = vmatprep.subr.bf16.mxu1 %v4281_v0 }
 0x445   :  { %4011 = vmatpush3.bf16.msra.mxu1 %v4010_v37 }
 0x446   :  { %4012 = vmatprep.subr.bf16.mxu1 %v4281_v0 }
 0x449   :  { %4014 = vmatpush3.bf16.msra.mxu1 %v4013_v38 }
 0x44a   :  { %4015 = vmatprep.subr.bf16.mxu1 %v4281_v0 }
 0x44d   :  { %4017 = vmatpush3.bf16.msra.mxu1 %v4016_v26 }
 0x44e   :  { %4018 = vmatprep.subr.bf16.mxu1 %v4281_v0 }
 0x451   :  { %4020 = vmatpush3.bf16.msra.mxu1 %v4019_v59 }
 0x452   :  { %4021 = vmatprep.subr.bf16.mxu1 %v4281_v0 }
 0x455   :  { %4023 = vmatpush3.bf16.msra.mxu1 %v4022_v56 }
 0x456   :  { %4024 = vmatprep.subr.bf16.mxu1 %v4281_v0 }
 0x459   :  { %4026 = vmatpush3.bf16.msra.mxu1 %v4025_v17 }
 0x45a   :  { %4027 = vmatprep.subr.bf16.mxu1 %v4281_v0 }
 0x45d   :  { %4029 = vmatpush3.bf16.msra.mxu1 %v4028_v61 }
 0x45e   :  { %4030 = vmatprep.subr.bf16.mxu1 %v4281_v0 }
 0x460   :  { %3527 = vmatmul.mubr.f32.vlgmr.msra.gmra.mrb[2].mxu1 %v2019_v52 }
 0x461   :  { %4032 = vmatpush3.bf16.msra.mxu1 %v4967_v58  ;;  %3561 = vmatprep.mubr.msk.f32.mxu1 %vm4282_vm0, %v4283_v1 }
 0x462   :  { %4033 = vmatprep.subr.bf16.mxu1 %v4281_v0 }
 0x465   :  { %4035 = vmatpush3.bf16.msra.mxu1 %v4975_v45 }
 0x466   :  { %4036 = vmatprep.subr.bf16.mxu1 %v4281_v0 }
 0x469   :  { %4038 = vmatpush3.bf16.msra.mxu1 %v5001_v8 }
 0x46a   :  { %4039 = vmatprep.subr.bf16.mxu1 %v4281_v0 }
 0x46d   :  { %4041 = vmatpush3.bf16.msra.mxu1 %v5009_v53 }
 0x46e   :  { %4042 = vmatprep.subr.bf16.mxu1 %v4281_v0 }
 0x471   :  { %4044 = vmatpush3.bf16.msra.mxu1 %v5017_v35 }
 0x472   :  { %4045 = vmatprep.subr.bf16.mxu1 %v4281_v0 }
 0x475   :  { %4047 = vmatpush3.bf16.msra.mxu1 %v5117_v23 }
 0x476   :  { %4048 = vmatprep.subr.bf16.mxu1 %v4281_v0 }
 0x479   :  { %4050 = vmatpush3.bf16.msra.mxu1 %v5121_v9 }
 0x47a   :  { %4051 = vmatprep.subr.bf16.mxu1 %v4281_v0 }
 0x47d   :  { %4053 = vmatpush3.bf16.msra.mxu1 %v5127_v60 }
 0x47e   :  { %4054 = vmatprep.subr.bf16.mxu1 %v4281_v0 }
 0x480   :  { %3562 = vmatmul.mubr.f32.vlgmr.msra.gmra.mrb[2].mxu1 %v2020_v19 }
 0x481   :  { %4056 = vmatpush3.bf16.msra.mxu1 %v4055_v6  ;;  %3596 = vmatprep.mubr.msk.f32.mxu1 %vm4282_vm0, %v4283_v1 }
 0x482   :  { %4057 = vmatprep.subr.bf16.mxu1 %v4281_v0 }
 0x485   :  { %4059 = vmatpush3.bf16.msra.mxu1 %v4058_v18 }
 0x486   :  { %4060 = vmatprep.subr.bf16.mxu1 %v4281_v0 }
 0x489   :  { %4062 = vmatpush3.bf16.msra.mxu1 %v4061_v5 }
 0x48a   :  { %4063 = vmatprep.subr.bf16.mxu1 %v4281_v0 }
 0x48d   :  { %4065 = vmatpush3.bf16.msra.mxu1 %v4064_v63 }
 0x48e   :  { %4066 = vmatprep.subr.bf16.mxu1 %v4281_v0 }
 0x491   :  { %4068 = vmatpush3.bf16.msra.mxu1 %v4067_v54 }
 0x492   :  { %4069 = vmatprep.subr.bf16.mxu1 %v4281_v0 }
 0x495   :  { %4071 = vmatpush3.bf16.msra.mxu1 %v4070_v15 }
 0x496   :  { %4072 = vmatprep.subr.bf16.mxu1 %v4281_v0 }
 0x499   :  { %4074 = vmatpush3.bf16.msra.mxu1 %v4073_v11 }
 0x49a   :  { %4075 = vmatprep.subr.bf16.mxu1 %v4281_v0 }
 0x49d   :  { %4077 = vmatpush3.bf16.msra.mxu1 %v4076_v42 }
 0x49e   :  { %4078 = vmatprep.subr.bf16.mxu1 %v4281_v0 }
 0x4a0   :  { %3597 = vmatmul.mubr.f32.vlgmr.msra.gmra.mrb[2].mxu1 %v5226_v49 }
 0x4a1   :  { %4080 = vmatpush3.bf16.msra.mxu1 %v4967_v58  ;;  %3631 = vmatprep.mubr.msk.f32.mxu1 %vm4282_vm0, %v4283_v1  ;;  %v2601_v1 = vld [vmem:[%s5351_s6] ss:$0 sm:$0xff] }
 0x4a2   :  { %4081 = vmatprep.subr.bf16.mxu1 %v4281_v0 }
 0x4a5   :  { %4083 = vmatpush3.bf16.msra.mxu1 %v4975_v45 }
 0x4a6   :  { %4084 = vmatprep.subr.bf16.mxu1 %v4281_v0 }
 0x4a9   :  { %4086 = vmatpush3.bf16.msra.mxu1 %v5001_v8 }
 0x4aa   :  { %4087 = vmatprep.subr.bf16.mxu1 %v4281_v0 }
 0x4ad   :  { %4089 = vmatpush3.bf16.msra.mxu1 %v5009_v53 }
 0x4ae   :  { %4090 = vmatprep.subr.bf16.mxu1 %v4281_v0 }
 0x4b1   :  { %4092 = vmatpush3.bf16.msra.mxu1 %v5017_v35 }
 0x4b2   :  { %4093 = vmatprep.subr.bf16.mxu1 %v4281_v0 }
 0x4b5   :  { %4095 = vmatpush3.bf16.msra.mxu1 %v5117_v23 }
 0x4b6   :  { %4096 = vmatprep.subr.bf16.mxu1 %v4281_v0 }
 0x4b9   :  { %4098 = vmatpush3.bf16.msra.mxu1 %v5121_v9 }
 0x4ba   :  { %4099 = vmatprep.subr.bf16.mxu1 %v4281_v0 }
 0x4bd   :  { %4101 = vmatpush3.bf16.msra.mxu1 %v5127_v60 }
 0x4c0   :  { %3632 = vmatmul.mubr.f32.vlgmr.msra.gmra.mrb[2].mxu1 %v5226_v49 }
 0x593   :  { %v2574_v45 = vpop.f32.mrb[2].mxu1 }
 0x594   :  { %v4106_v58 = vadd.f32 %v2601_v1, %v2574_v45  ;;  %v3633_v8 = vpop.f32.mrb[3].mxu1 }
 0x596   :  { %4155 = vtanh.f32 %v4106_v58 }
 0x5a0   :  { %v4156_v53 = vpop.eup %4155 }
 0x5a1   :  { %2579 = vst [vmem:[#allocation10] sm:$0xff] %v4156_v53 }
 0x5a2   :  { %4256 = shalt.err (!%p4253_p8)
}
 0x5a3   :  { %s4257_s6 = scalar_lea.hbm %s5352_s7, 128 }
 0x5a4   :  { %p4258_p9 = scmp.ne.s32.totalorder %s5352_s7, %s4257_s6  ;;  %p4261_p10 = scmp.lt.u32.totalorder %s4257_s6, %s5352_s7 }
 0x5a6   :  { %p4263_p11 = pnand %p4261_p10, %p4258_p9 }
 0x5a8   :  { %4266 = shalt.err (!%p4263_p11)
}
 0x5a9   :  { %2589 = dma.vmem_to_hbm [thread:$0]  %s2587_s30, 128, %s5352_s7, [#allocation4]  }
 0x5aa   :  { %4273 = dma.done.wait [#allocation4], 128  }
 0x5ab   :  { %4274 = vsyncadd [#allocation4], 4294967168 }
 0x5ac   :  { %2593 = vsyncpa [#allocation3], 1 }
 0x5ad   :  { %2594 = vsyncpa [#allocation6], 1 }
 0x5ae   :  { %2595 = vsyncpa [#allocation9], 1 }
 0x5af   :  { %2596 = vsyncpa [#allocation4], 1 }

</bundles_post_ra>
